<compile_context>
chip_gen: v6e
topology: v6e:2x2x1
jax: 0.10.0
libtpu: 0.0.40
codegen_flags: <defaults>
</compile_context>

<pallas_src>
import functools

import jax
import jax.numpy as jnp
import numpy as np
from jax.experimental import pallas as pl
from jax.experimental.pallas import tpu as pltpu


# ----------------------------------------------------------------------------
# Pallas kernels
# ----------------------------------------------------------------------------
def _conv_mm_kernel(*refs, n_in, fuse):
    """One grid step == one batch image.

    refs (in order):
      patches_i : (1, K_i, HW)  bf16   (im2col, K index = tap*Cin_i + c)
      w_i       : (Cout, K_i)   bf16
      bias      : (Cout, 1)     f32
      [w5       : (Cout, 1)     f32]   only if fuse  (fused 1x1 conv5)
      [b5       : (1, 1)        f32]   only if fuse
      out       : (1, Cout or 1, HW) f32
    """
    x_refs = refs[:n_in]
    w_refs = refs[n_in:2 * n_in]
    b_ref = refs[2 * n_in]
    if fuse:
        w5_ref = refs[2 * n_in + 1]
        b5_ref = refs[2 * n_in + 2]
        o_ref = refs[2 * n_in + 3]
    else:
        o_ref = refs[2 * n_in + 1]

    # (Cout, K) @ (K, HW) -> (Cout, HW): a single MXU matmul per input group,
    # with the H*W axis (256..4096) on lanes (lane-dense output).
    acc = jnp.dot(w_refs[0][...], x_refs[0][0],
                  preferred_element_type=jnp.float32)
    for x_ref, w_ref in zip(x_refs[1:], w_refs[1:]):
        acc = acc + jnp.dot(w_ref[...], x_ref[0],
                            preferred_element_type=jnp.float32)
    acc = acc + b_ref[...]                       # (Cout, 1) broadcast over lanes

    if fuse:
        # Fused conv5 (1x1, Cout=1): tiny K -> sublane reduction on the VPU.
        out = jnp.sum(w5_ref[...] * acc, axis=0, keepdims=True) + b5_ref[...]
        o_ref[0] = out.astype(o_ref.dtype)
    else:
        o_ref[0] = acc.astype(o_ref.dtype)


def _mul2_kernel(a_ref, b_ref, o_ref):
    o_ref[...] = a_ref[...] * b_ref[...]


def _mul3_kernel(a_ref, b_ref, c_ref, o_ref):
    o_ref[...] = a_ref[...] * b_ref[...] * c_ref[...]


# ----------------------------------------------------------------------------
# Wrappers
# ----------------------------------------------------------------------------
def _im2col(x, KH, KW, padding):
    """(B, C, H, W) f32 -> (B, KH*KW*C, H*W) bf16 patches (tap-major, chan-minor)."""
    B, C, H, W = x.shape
    xp = jnp.pad(x.astype(jnp.bfloat16),
                 ((0, 0), (0, 0), (padding, padding), (padding, padding)))
    cols = []
    for dy in range(KH):
        for dx in range(KW):
            cols.append(xp[:, :, dy:dy + H, dx:dx + W].reshape(B, C, H * W))
    return jnp.concatenate(cols, axis=1)


def conv2d_pallas(inputs, w_hwio, bias, *, padding, w5=None, b5=None):
    """Conv2d (stride 1) over the channel-concat of `inputs` as one Pallas
    matmul kernel per batch image.  Optionally fuses a trailing 1x1 conv
    (w5, b5) with a single output channel (the "conv4 + conv5" path)."""
    KH, KW, _, Cout = w_hwio.shape
    B, _, H, W = inputs[0].shape
    HW = H * W

    patches, wchunks = [], []
    off = 0
    for x in inputs:
        Ci = x.shape[1]
        patches.append(_im2col(x, KH, KW, padding))
        wc = w_hwio[:, :, off:off + Ci, :].reshape(KH * KW * Ci, Cout)
        wchunks.append(jnp.transpose(wc).astype(jnp.bfloat16))   # (Cout, K_i)
        off += Ci

    fuse = w5 is not None
    out_c = 1 if fuse else Cout

    args = list(patches) + list(wchunks) + [bias.reshape(Cout, 1).astype(jnp.float32)]
    in_specs = ([pl.BlockSpec((1, p.shape[1], HW), lambda i: (i, 0, 0))
                 for p in patches]
                + [pl.BlockSpec(w.shape, lambda i: (0, 0)) for w in wchunks]
                + [pl.BlockSpec((Cout, 1), lambda i: (0, 0))])
    if fuse:
        args += [w5.reshape(Cout, 1).astype(jnp.float32),
                 b5.reshape(1, 1).astype(jnp.float32)]
        in_specs += [pl.BlockSpec((Cout, 1), lambda i: (0, 0)),
                     pl.BlockSpec((1, 1), lambda i: (0, 0))]

    out = pl.pallas_call(
        functools.partial(_conv_mm_kernel, n_in=len(inputs), fuse=fuse),
        out_shape=jax.ShapeDtypeStruct((B, out_c, HW), jnp.float32),
        grid=(B,),                                   # one image per grid step
        in_specs=in_specs,
        out_specs=pl.BlockSpec((1, out_c, HW), lambda i: (i, 0, 0)),
        compiler_params=pltpu.CompilerParams(
            dimension_semantics=("parallel",)),
    )(*args)
    return out.reshape(B, out_c, H, W)


def mul2_pallas(a, b):
    B, C, H, W = a.shape
    a2, b2 = a.reshape(B * C, H * W), b.reshape(B * C, H * W)
    out = pl.pallas_call(
        _mul2_kernel, out_shape=jax.ShapeDtypeStruct(a2.shape, a.dtype))(a2, b2)
    return out.reshape(B, C, H, W)


def mul3_pallas(a, b, c):
    B, C, H, W = a.shape
    a2 = a.reshape(B * C, H * W)
    b2 = b.reshape(B * C, H * W)
    c2 = c.reshape(B * C, H * W)
    out = pl.pallas_call(
        _mul3_kernel, out_shape=jax.ShapeDtypeStruct(a2.shape, a.dtype))(a2, b2, c2)
    return out.reshape(B, C, H, W)


def _interp_matrix(n_in, n_out):
    """Constant matrix for 1-D bilinear resize with align_corners=True."""
    src = np.arange(n_out, dtype=np.float64) * (n_in - 1) / (n_out - 1)
    i0 = np.floor(src).astype(np.int64)
    i1 = np.minimum(i0 + 1, n_in - 1)
    w = src - i0
    A = np.zeros((n_out, n_in), dtype=np.float32)
    A[np.arange(n_out), i0] += (1.0 - w).astype(np.float32)
    A[np.arange(n_out), i1] += w.astype(np.float32)
    return jnp.asarray(A)


def upsample_bilinear_x2(x):
    """nn.Upsample(scale_factor=2, mode='bilinear', align_corners=True), NCHW,
    expressed as two constant interpolation matmuls (no gathers)."""
    B, C, H, W = x.shape
    Ah = _interp_matrix(H, 2 * H)
    Aw = _interp_matrix(W, 2 * W)
    return jnp.einsum('oh,bchw,pw->bcop', Ah, x, Aw)


# ----------------------------------------------------------------------------
# Module: parameters + forward
# ----------------------------------------------------------------------------
def init_params(channel, key, dtype=jnp.float32):
    k1, k2, k3, k4 = jax.random.split(key, 4)

    def conv_w(k, kh, kw, cin, cout):           # std=0.01, bias=0 (as in __init__)
        return (0.01 * jax.random.normal(k, (kh, kw, cin, cout))).astype(dtype)

    return {
        "conv_concat2_w": conv_w(k1, 3, 3, 2 * channel, 2 * channel),
        "conv_concat2_b": jnp.zeros((2 * channel,), dtype),
        "conv_concat3_w": conv_w(k2, 3, 3, 3 * channel, 3 * channel),
        "conv_concat3_b": jnp.zeros((3 * channel,), dtype),
        "conv4_w": conv_w(k3, 3, 3, 3 * channel, 3 * channel),
        "conv4_b": jnp.zeros((3 * channel,), dtype),
        "conv5_w": conv_w(k4, 1, 1, 3 * channel, 1),
        "conv5_b": jnp.zeros((1,), dtype),
    }


def _forward(params, x1, x2, x3):
    up = upsample_bilinear_x2
    x1_up = up(x1)                                 # reused below (XLA CSEs too)
    x2_up = up(x2)

    x2_1 = mul2_pallas(x1_up, x2)
    x3_1 = mul3_pallas(up(x1_up), x2_up, x3)

    # conv_concat2 on cat([x2_1, up(x1)]) -- concat is never materialized:
    # the two operands are separate K-chunks of one Pallas matmul kernel.
    x2_2 = conv2d_pallas([x2_1, x1_up],
                         params["conv_concat2_w"], params["conv_concat2_b"],
                         padding=1)
    x3_2 = conv2d_pallas([x3_1, up(x2_2)],
                         params["conv_concat3_w"], params["conv_concat3_b"],
                         padding=1)
    # conv4 + conv5 fused: the conv4 activation never hits HBM.
    return conv2d_pallas([x3_2], params["conv4_w"], params["conv4_b"],
                         padding=1,
                         w5=params["conv5_w"], b5=params["conv5_b"])


aggregation_pruned_forward = jax.jit(_forward)


# ----------------------------------------------------------------------------
# Pure-JAX f32 reference (for a sanity check)
# ----------------------------------------------------------------------------
def _conv_ref(x_nchw, w_hwio, bias, padding):
    out = jax.lax.conv_general_dilated(
        x_nchw, w_hwio, (1, 1), [(padding, padding)] * 2,
        dimension_numbers=("NCHW", "HWIO", "NCHW"))
    return out + bias[None, :, None, None]


def _forward_ref(params, x1, x2, x3):
    up = upsample_bilinear_x2
    x2_1 = up(x1) * x2
    x3_1 = up(up(x1)) * up(x2) * x3
    x2_2 = _conv_ref(jnp.concatenate([x2_1, up(x1)], axis=1),
                     params["conv_concat2_w"], params["conv_concat2_b"], 1)
    x3_2 = _conv_ref(jnp.concatenate([x3_1, up(x2_2)], axis=1),
                     params["conv_concat3_w"], params["conv_concat3_b"], 1)
    x = _conv_ref(x3_2, params["conv4_w"], params["conv4_b"], 1)
    x = _conv_ref(x, params["conv5_w"], params["conv5_b"], 0)
    return x


forward_ref = jax.jit(_forward_ref)


if __name__ == "__main__":
    channel = 4
    B, H1, W1 = 2, 8, 8

    key = jax.random.PRNGKey(0)
    kp, k1, k2, k3 = jax.random.split(key, 4)
    params = init_params(channel, kp)

    x1 = jax.random.normal(k1, (B, channel, H1, W1), jnp.float32)
    x2 = jax.random.normal(k2, (B, channel, 2 * H1, 2 * W1), jnp.float32)
    x3 = jax.random.normal(k3, (B, channel, 4 * H1, 4 * W1), jnp.float32)

    out = jax.block_until_ready(aggregation_pruned_forward(params, x1, x2, x3))
    ref = jax.block_until_ready(forward_ref(params, x1, x2, x3))

    assert out.shape == (B, 1, 4 * H1, 4 * W1), out.shape
    # Pallas path uses bf16 matmul operands with f32 accumulation.
    np.testing.assert_allclose(np.asarray(out), np.asarray(ref),
                               rtol=2e-2, atol=1e-3)

    print("KERNEL_OK")
</pallas_src>

<mosaic_0001>
module attributes {stable_mosaic.version = 11 : i64} {
  func.func @_mul2_kernel(%arg0: memref<8x256xf32, #tpu.memory_space<vmem>>, %arg1: memref<8x256xf32, #tpu.memory_space<vmem>>, %arg2: memref<8x256xf32, #tpu.memory_space<vmem>>) attributes {dimension_semantics = [], scalar_prefetch = 0 : i64, scratch_operands = 0 : i64, tpu.core_type = #tpu.core_type<tc>} {
    %c0 = arith.constant 0 : index
    %c0_0 = arith.constant 0 : index
    %0 = vector.load %arg0[%c0, %c0_0] : memref<8x256xf32, #tpu.memory_space<vmem>>, vector<8x256xf32>
    %c0_1 = arith.constant 0 : index
    %c0_2 = arith.constant 0 : index
    %1 = vector.load %arg1[%c0_1, %c0_2] : memref<8x256xf32, #tpu.memory_space<vmem>>, vector<8x256xf32>
    %2 = arith.mulf %0, %1 : vector<8x256xf32>
    %c0_3 = arith.constant 0 : index
    %c0_4 = arith.constant 0 : index
    %3 = vector.load %arg2[%c0_3, %c0_4] : memref<8x256xf32, #tpu.memory_space<vmem>>, vector<8x256xf32>
    tpu.vector_store %arg2[%c0_3, %c0_4], %2 {strides = array<i32>} : memref<8x256xf32, #tpu.memory_space<vmem>>, vector<8x256xf32>,
    return
  }
}

module attributes {stable_mosaic.version = 11 : i64} {
  func.func @_conv_mm_kernel(%arg0: i32, %arg1: memref<1x36x256xbf16, #tpu.memory_space<vmem>>, %arg2: memref<1x36x256xbf16, #tpu.memory_space<vmem>>, %arg3: memref<8x36xbf16, #tpu.memory_space<vmem>>, %arg4: memref<8x36xbf16, #tpu.memory_space<vmem>>, %arg5: memref<8x1xf32, #tpu.memory_space<vmem>>, %arg6: memref<1x8x256xf32, #tpu.memory_space<vmem>>) attributes {dimension_semantics = [#tpu.dimension_semantics<parallel>], iteration_bounds = array<i64: 2>, scalar_prefetch = 0 : i64, scratch_operands = 0 : i64, tpu.core_type = #tpu.core_type<tc>, window_params = [{transform_indices = @transform_0, window_bounds = array<i64: 1, 36, 256>}, {transform_indices = @transform_1, window_bounds = array<i64: 1, 36, 256>}, {pipeline_mode = #tpu.pipeline_mode<synchronous>, transform_indices = @transform_2, window_bounds = array<i64: 8, 36>}, {pipeline_mode = #tpu.pipeline_mode<synchronous>, transform_indices = @transform_3, window_bounds = array<i64: 8, 36>}, {pipeline_mode = #tpu.pipeline_mode<synchronous>, transform_indices = @transform_4, window_bounds = array<i64: 8, 1>}, {transform_indices = @transform_5, window_bounds = array<i64: 1, 8, 256>}]} {
    %c0 = arith.constant 0 : index
    %c0_0 = arith.constant 0 : index
    %0 = vector.load %arg3[%c0, %c0_0] : memref<8x36xbf16, #tpu.memory_space<vmem>>, vector<8x36xbf16>
    %c0_1 = arith.constant 0 : index
    %c0_2 = arith.constant 0 : index
    %c0_3 = arith.constant 0 : index
    %1 = vector.load %arg1[%c0_1, %c0_2, %c0_3] : memref<1x36x256xbf16, #tpu.memory_space<vmem>>, vector<1x36x256xbf16>
    %2 = vector.shape_cast %1 : vector<1x36x256xbf16> to vector<36x256xbf16>
    %cst = arith.constant dense<0.000000e+00> : vector<8x256xf32>
    %3 = tpu.matmul %0, %2, %cst {dimension_numbers = #tpu.dot_dimension_numbers<[1], [0], [0], [1], [0, 0, 1, 1], [], []>} : vector<8x36xbf16>, vector<36x256xbf16>, vector<8x256xf32> -> vector<8x256xf32>
    %c0_4 = arith.constant 0 : index
    %c0_5 = arith.constant 0 : index
    %4 = vector.load %arg4[%c0_4, %c0_5] : memref<8x36xbf16, #tpu.memory_space<vmem>>, vector<8x36xbf16>
    %c0_6 = arith.constant 0 : index
    %c0_7 = arith.constant 0 : index
    %c0_8 = arith.constant 0 : index
    %5 = vector.load %arg2[%c0_6, %c0_7, %c0_8] : memref<1x36x256xbf16, #tpu.memory_space<vmem>>, vector<1x36x256xbf16>
    %6 = vector.shape_cast %5 : vector<1x36x256xbf16> to vector<36x256xbf16>
    %cst_9 = arith.constant dense<0.000000e+00> : vector<8x256xf32>
    %7 = tpu.matmul %4, %6, %cst_9 {dimension_numbers = #tpu.dot_dimension_numbers<[1], [0], [0], [1], [0, 0, 1, 1], [], []>} : vector<8x36xbf16>, vector<36x256xbf16>, vector<8x256xf32> -> vector<8x256xf32>
    %8 = arith.addf %3, %7 : vector<8x256xf32>
    %c0_10 = arith.constant 0 : index
    %c0_11 = arith.constant 0 : index
    %9 = vector.load %arg5[%c0_10, %c0_11] : memref<8x1xf32, #tpu.memory_space<vmem>>, vector<8x1xf32>
    %10 = vector.broadcast %9 : vector<8x1xf32> to vector<8x256xf32>
    %11 = arith.addf %8, %10 : vector<8x256xf32>
    %c0_12 = arith.constant 0 : index
    %c0_13 = arith.constant 0 : index
    %c0_14 = arith.constant 0 : index
    %12 = vector.load %arg6[%c0_12, %c0_13, %c0_14] : memref<1x8x256xf32, #tpu.memory_space<vmem>>, vector<1x8x256xf32>
    %13 = vector.shape_cast %12 : vector<1x8x256xf32> to vector<8x256xf32>
    %14 = vector.shape_cast %11 : vector<8x256xf32> to vector<1x8x256xf32>
    tpu.vector_store %arg6[%c0_12, %c0_13, %c0_14], %14 {strides = array<i32>} : memref<1x8x256xf32, #tpu.memory_space<vmem>>, vector<1x8x256xf32>,
    return
  }
  func.func @transform_0(%arg0: i32) -> (i32, i32, i32) {
    %c0_i32 = arith.constant 0 : i32
    %c0_i32_0 = arith.constant 0 : i32
    %c0_i32_1 = arith.constant 0 : i32
    return %arg0, %c0_i32, %c0_i32_0 : i32, i32, i32
  }
  func.func @transform_1(%arg0: i32) -> (i32, i32, i32) {
    %c0_i32 = arith.constant 0 : i32
    %c0_i32_0 = arith.constant 0 : i32
    %c0_i32_1 = arith.constant 0 : i32
    return %arg0, %c0_i32, %c0_i32_0 : i32, i32, i32
  }
  func.func @transform_2(%arg0: i32) -> (i32, i32) {
    %c0_i32 = arith.constant 0 : i32
    %c0_i32_0 = arith.constant 0 : i32
    %c0_i32_1 = arith.constant 0 : i32
    return %c0_i32, %c0_i32_0 : i32, i32
  }
  func.func @transform_3(%arg0: i32) -> (i32, i32) {
    %c0_i32 = arith.constant 0 : i32
    %c0_i32_0 = arith.constant 0 : i32
    %c0_i32_1 = arith.constant 0 : i32
    return %c0_i32, %c0_i32_0 : i32, i32
  }
  func.func @transform_4(%arg0: i32) -> (i32, i32) {
    %c0_i32 = arith.constant 0 : i32
    %c0_i32_0 = arith.constant 0 : i32
    %c0_i32_1 = arith.constant 0 : i32
    return %c0_i32, %c0_i32_0 : i32, i32
  }
  func.func @transform_5(%arg0: i32) -> (i32, i32, i32) {
    %c0_i32 = arith.constant 0 : i32
    %c0_i32_0 = arith.constant 0 : i32
    %c0_i32_1 = arith.constant 0 : i32
    return %arg0, %c0_i32, %c0_i32_0 : i32, i32, i32
  }
}

module attributes {stable_mosaic.version = 11 : i64} {
  func.func @_mul3_kernel(%arg0: memref<8x1024xf32, #tpu.memory_space<vmem>>, %arg1: memref<8x1024xf32, #tpu.memory_space<vmem>>, %arg2: memref<8x1024xf32, #tpu.memory_space<vmem>>, %arg3: memref<8x1024xf32, #tpu.memory_space<vmem>>) attributes {dimension_semantics = [], scalar_prefetch = 0 : i64, scratch_operands = 0 : i64, tpu.core_type = #tpu.core_type<tc>} {
    %c0 = arith.constant 0 : index
    %c0_0 = arith.constant 0 : index
    %0 = vector.load %arg0[%c0, %c0_0] : memref<8x1024xf32, #tpu.memory_space<vmem>>, vector<8x1024xf32>
    %c0_1 = arith.constant 0 : index
    %c0_2 = arith.constant 0 : index
    %1 = vector.load %arg1[%c0_1, %c0_2] : memref<8x1024xf32, #tpu.memory_space<vmem>>, vector<8x1024xf32>
    %2 = arith.mulf %0, %1 : vector<8x1024xf32>
    %c0_3 = arith.constant 0 : index
    %c0_4 = arith.constant 0 : index
    %3 = vector.load %arg2[%c0_3, %c0_4] : memref<8x1024xf32, #tpu.memory_space<vmem>>, vector<8x1024xf32>
    %4 = arith.mulf %2, %3 : vector<8x1024xf32>
    %c0_5 = arith.constant 0 : index
    %c0_6 = arith.constant 0 : index
    %5 = vector.load %arg3[%c0_5, %c0_6] : memref<8x1024xf32, #tpu.memory_space<vmem>>, vector<8x1024xf32>
    tpu.vector_store %arg3[%c0_5, %c0_6], %4 {strides = array<i32>} : memref<8x1024xf32, #tpu.memory_space<vmem>>, vector<8x1024xf32>,
    return
  }
}

module attributes {stable_mosaic.version = 11 : i64} {
  func.func @_conv_mm_kernel(%arg0: i32, %arg1: memref<1x36x1024xbf16, #tpu.memory_space<vmem>>, %arg2: memref<1x72x1024xbf16, #tpu.memory_space<vmem>>, %arg3: memref<12x36xbf16, #tpu.memory_space<vmem>>, %arg4: memref<12x72xbf16, #tpu.memory_space<vmem>>, %arg5: memref<12x1xf32, #tpu.memory_space<vmem>>, %arg6: memref<1x12x1024xf32, #tpu.memory_space<vmem>>) attributes {dimension_semantics = [#tpu.dimension_semantics<parallel>], iteration_bounds = array<i64: 2>, scalar_prefetch = 0 : i64, scratch_operands = 0 : i64, tpu.core_type = #tpu.core_type<tc>, window_params = [{transform_indices = @transform_0, window_bounds = array<i64: 1, 36, 1024>}, {transform_indices = @transform_1, window_bounds = array<i64: 1, 72, 1024>}, {pipeline_mode = #tpu.pipeline_mode<synchronous>, transform_indices = @transform_2, window_bounds = array<i64: 12, 36>}, {pipeline_mode = #tpu.pipeline_mode<synchronous>, transform_indices = @transform_3, window_bounds = array<i64: 12, 72>}, {pipeline_mode = #tpu.pipeline_mode<synchronous>, transform_indices = @transform_4, window_bounds = array<i64: 12, 1>}, {transform_indices = @transform_5, window_bounds = array<i64: 1, 12, 1024>}]} {
    %c0 = arith.constant 0 : index
    %c0_0 = arith.constant 0 : index
    %0 = vector.load %arg3[%c0, %c0_0] : memref<12x36xbf16, #tpu.memory_space<vmem>>, vector<12x36xbf16>
    %c0_1 = arith.constant 0 : index
    %c0_2 = arith.constant 0 : index
    %c0_3 = arith.constant 0 : index
    %1 = vector.load %arg1[%c0_1, %c0_2, %c0_3] : memref<1x36x1024xbf16, #tpu.memory_space<vmem>>, vector<1x36x1024xbf16>
    %2 = vector.shape_cast %1 : vector<1x36x1024xbf16> to vector<36x1024xbf16>
    %cst = arith.constant dense<0.000000e+00> : vector<12x1024xf32>
    %3 = tpu.matmul %0, %2, %cst {dimension_numbers = #tpu.dot_dimension_numbers<[1], [0], [0], [1], [0, 0, 1, 1], [], []>} : vector<12x36xbf16>, vector<36x1024xbf16>, vector<12x1024xf32> -> vector<12x1024xf32>
    %c0_4 = arith.constant 0 : index
    %c0_5 = arith.constant 0 : index
    %4 = vector.load %arg4[%c0_4, %c0_5] : memref<12x72xbf16, #tpu.memory_space<vmem>>, vector<12x72xbf16>
    %c0_6 = arith.constant 0 : index
    %c0_7 = arith.constant 0 : index
    %c0_8 = arith.constant 0 : index
    %5 = vector.load %arg2[%c0_6, %c0_7, %c0_8] : memref<1x72x1024xbf16, #tpu.memory_space<vmem>>, vector<1x72x1024xbf16>
    %6 = vector.shape_cast %5 : vector<1x72x1024xbf16> to vector<72x1024xbf16>
    %cst_9 = arith.constant dense<0.000000e+00> : vector<12x1024xf32>
    %7 = tpu.matmul %4, %6, %cst_9 {dimension_numbers = #tpu.dot_dimension_numbers<[1], [0], [0], [1], [0, 0, 1, 1], [], []>} : vector<12x72xbf16>, vector<72x1024xbf16>, vector<12x1024xf32> -> vector<12x1024xf32>
    %8 = arith.addf %3, %7 : vector<12x1024xf32>
    %c0_10 = arith.constant 0 : index
    %c0_11 = arith.constant 0 : index
    %9 = vector.load %arg5[%c0_10, %c0_11] : memref<12x1xf32, #tpu.memory_space<vmem>>, vector<12x1xf32>
    %10 = vector.broadcast %9 : vector<12x1xf32> to vector<12x1024xf32>
    %11 = arith.addf %8, %10 : vector<12x1024xf32>
    %c0_12 = arith.constant 0 : index
    %c0_13 = arith.constant 0 : index
    %c0_14 = arith.constant 0 : index
    %12 = vector.load %arg6[%c0_12, %c0_13, %c0_14] : memref<1x12x1024xf32, #tpu.memory_space<vmem>>, vector<1x12x1024xf32>
    %13 = vector.shape_cast %12 : vector<1x12x1024xf32> to vector<12x1024xf32>
    %14 = vector.shape_cast %11 : vector<12x1024xf32> to vector<1x12x1024xf32>
    tpu.vector_store %arg6[%c0_12, %c0_13, %c0_14], %14 {strides = array<i32>} : memref<1x12x1024xf32, #tpu.memory_space<vmem>>, vector<1x12x1024xf32>,
    return
  }
  func.func @transform_0(%arg0: i32) -> (i32, i32, i32) {
    %c0_i32 = arith.constant 0 : i32
    %c0_i32_0 = arith.constant 0 : i32
    %c0_i32_1 = arith.constant 0 : i32
    return %arg0, %c0_i32, %c0_i32_0 : i32, i32, i32
  }
  func.func @transform_1(%arg0: i32) -> (i32, i32, i32) {
    %c0_i32 = arith.constant 0 : i32
    %c0_i32_0 = arith.constant 0 : i32
    %c0_i32_1 = arith.constant 0 : i32
    return %arg0, %c0_i32, %c0_i32_0 : i32, i32, i32
  }
  func.func @transform_2(%arg0: i32) -> (i32, i32) {
    %c0_i32 = arith.constant 0 : i32
    %c0_i32_0 = arith.constant 0 : i32
    %c0_i32_1 = arith.constant 0 : i32
    return %c0_i32, %c0_i32_0 : i32, i32
  }
  func.func @transform_3(%arg0: i32) -> (i32, i32) {
    %c0_i32 = arith.constant 0 : i32
    %c0_i32_0 = arith.constant 0 : i32
    %c0_i32_1 = arith.constant 0 : i32
    return %c0_i32, %c0_i32_0 : i32, i32
  }
  func.func @transform_4(%arg0: i32) -> (i32, i32) {
    %c0_i32 = arith.constant 0 : i32
    %c0_i32_0 = arith.constant 0 : i32
    %c0_i32_1 = arith.constant 0 : i32
    return %c0_i32, %c0_i32_0 : i32, i32
  }
  func.func @transform_5(%arg0: i32) -> (i32, i32, i32) {
    %c0_i32 = arith.constant 0 : i32
    %c0_i32_0 = arith.constant 0 : i32
    %c0_i32_1 = arith.constant 0 : i32
    return %arg0, %c0_i32, %c0_i32_0 : i32, i32, i32
  }
}

module attributes {stable_mosaic.version = 11 : i64} {
  func.func @_conv_mm_kernel(%arg0: i32, %arg1: memref<1x108x1024xbf16, #tpu.memory_space<vmem>>, %arg2: memref<12x108xbf16, #tpu.memory_space<vmem>>, %arg3: memref<12x1xf32, #tpu.memory_space<vmem>>, %arg4: memref<12x1xf32, #tpu.memory_space<vmem>>, %arg5: memref<1x1xf32, #tpu.memory_space<vmem>>, %arg6: memref<1x1x1024xf32, #tpu.memory_space<vmem>>) attributes {dimension_semantics = [#tpu.dimension_semantics<parallel>], iteration_bounds = array<i64: 2>, scalar_prefetch = 0 : i64, scratch_operands = 0 : i64, tpu.core_type = #tpu.core_type<tc>, window_params = [{transform_indices = @transform_0, window_bounds = array<i64: 1, 108, 1024>}, {pipeline_mode = #tpu.pipeline_mode<synchronous>, transform_indices = @transform_1, window_bounds = array<i64: 12, 108>}, {pipeline_mode = #tpu.pipeline_mode<synchronous>, transform_indices = @transform_2, window_bounds = array<i64: 12, 1>}, {pipeline_mode = #tpu.pipeline_mode<synchronous>, transform_indices = @transform_3, window_bounds = array<i64: 12, 1>}, {pipeline_mode = #tpu.pipeline_mode<synchronous>, transform_indices = @transform_4, window_bounds = array<i64: 1, 1>}, {transform_indices = @transform_5, window_bounds = array<i64: 1, 1, 1024>}]} {
    %c0 = arith.constant 0 : index
    %c0_0 = arith.constant 0 : index
    %0 = vector.load %arg2[%c0, %c0_0] : memref<12x108xbf16, #tpu.memory_space<vmem>>, vector<12x108xbf16>
    %c0_1 = arith.constant 0 : index
    %c0_2 = arith.constant 0 : index
    %c0_3 = arith.constant 0 : index
    %1 = vector.load %arg1[%c0_1, %c0_2, %c0_3] : memref<1x108x1024xbf16, #tpu.memory_space<vmem>>, vector<1x108x1024xbf16>
    %2 = vector.shape_cast %1 : vector<1x108x1024xbf16> to vector<108x1024xbf16>
    %cst = arith.constant dense<0.000000e+00> : vector<12x1024xf32>
    %3 = tpu.matmul %0, %2, %cst {dimension_numbers = #tpu.dot_dimension_numbers<[1], [0], [0], [1], [0, 0, 1, 1], [], []>} : vector<12x108xbf16>, vector<108x1024xbf16>, vector<12x1024xf32> -> vector<12x1024xf32>
    %c0_4 = arith.constant 0 : index
    %c0_5 = arith.constant 0 : index
    %4 = vector.load %arg3[%c0_4, %c0_5] : memref<12x1xf32, #tpu.memory_space<vmem>>, vector<12x1xf32>
    %5 = vector.broadcast %4 : vector<12x1xf32> to vector<12x1024xf32>
    %6 = arith.addf %3, %5 : vector<12x1024xf32>
    %c0_6 = arith.constant 0 : index
    %c0_7 = arith.constant 0 : index
    %7 = vector.load %arg4[%c0_6, %c0_7] : memref<12x1xf32, #tpu.memory_space<vmem>>, vector<12x1xf32>
    %8 = vector.broadcast %7 : vector<12x1xf32> to vector<12x1024xf32>
    %9 = arith.mulf %8, %6 : vector<12x1024xf32>
    %cst_8 = arith.constant dense<0.000000e+00> : vector<1024xf32>
    %10 = vector.multi_reduction <add>, %9, %cst_8 [0] : vector<12x1024xf32> to vector<1024xf32>
    %11 = vector.shape_cast %10 : vector<1024xf32> to vector<1x1024xf32>
    %c0_9 = arith.constant 0 : index
    %c0_10 = arith.constant 0 : index
    %12 = vector.load %arg5[%c0_9, %c0_10] : memref<1x1xf32, #tpu.memory_space<vmem>>, vector<1x1xf32>
    %13 = vector.broadcast %12 : vector<1x1xf32> to vector<1x1024xf32>
    %14 = arith.addf %11, %13 : vector<1x1024xf32>
    %c0_11 = arith.constant 0 : index
    %c0_12 = arith.constant 0 : index
    %c0_13 = arith.constant 0 : index
    %15 = vector.load %arg6[%c0_11, %c0_12, %c0_13] : memref<1x1x1024xf32, #tpu.memory_space<vmem>>, vector<1x1x1024xf32>
    %16 = vector.shape_cast %15 : vector<1x1x1024xf32> to vector<1x1024xf32>
    %17 = vector.shape_cast %14 : vector<1x1024xf32> to vector<1x1x1024xf32>
    tpu.vector_store %arg6[%c0_11, %c0_12, %c0_13], %17 {strides = array<i32>} : memref<1x1x1024xf32, #tpu.memory_space<vmem>>, vector<1x1x1024xf32>,
    return
  }
  func.func @transform_0(%arg0: i32) -> (i32, i32, i32) {
    %c0_i32 = arith.constant 0 : i32
    %c0_i32_0 = arith.constant 0 : i32
    %c0_i32_1 = arith.constant 0 : i32
    return %arg0, %c0_i32, %c0_i32_0 : i32, i32, i32
  }
  func.func @transform_1(%arg0: i32) -> (i32, i32) {
    %c0_i32 = arith.constant 0 : i32
    %c0_i32_0 = arith.constant 0 : i32
    %c0_i32_1 = arith.constant 0 : i32
    return %c0_i32, %c0_i32_0 : i32, i32
  }
  func.func @transform_2(%arg0: i32) -> (i32, i32) {
    %c0_i32 = arith.constant 0 : i32
    %c0_i32_0 = arith.constant 0 : i32
    %c0_i32_1 = arith.constant 0 : i32
    return %c0_i32, %c0_i32_0 : i32, i32
  }
  func.func @transform_3(%arg0: i32) -> (i32, i32) {
    %c0_i32 = arith.constant 0 : i32
    %c0_i32_0 = arith.constant 0 : i32
    %c0_i32_1 = arith.constant 0 : i32
    return %c0_i32, %c0_i32_0 : i32, i32
  }
  func.func @transform_4(%arg0: i32) -> (i32, i32) {
    %c0_i32 = arith.constant 0 : i32
    %c0_i32_0 = arith.constant 0 : i32
    %c0_i32_1 = arith.constant 0 : i32
    return %c0_i32, %c0_i32_0 : i32, i32
  }
  func.func @transform_5(%arg0: i32) -> (i32, i32, i32) {
    %c0_i32 = arith.constant 0 : i32
    %c0_i32_0 = arith.constant 0 : i32
    %c0_i32_1 = arith.constant 0 : i32
    return %arg0, %c0_i32, %c0_i32_0 : i32, i32, i32
  }
}

</mosaic_0001>

<bundles_post_ra>
// kernel: _forward.5
= control target key start
LH: loop header
LB: loop body
LE: loop exit
PB: predicated region body
PF: predicated region fallthrough
CT: control target
= control target key end

     0   :  { %s56_s0 = inlined_call_operand.vmem [shape: f32[8,256], index: 0, kind: input, shape index: {}]   ;;  %s57_s1 = inlined_call_operand.vmem [shape: f32[8,256], index: 1, kind: input, shape index: {}]   ;;  %s58_s2 = inlined_call_operand.vmem [shape: f32[8,256], index: 2, kind: output, shape index: {}]  }
   0x1   :  { %v11_v0 = vld [vmem:[%s56_s0] sm:$0xff]  ;;  %v12_v2 = vld [vmem:[%s56_s0 + $0x8] sm:$0xff] }
   0x2   :  { %v13_v1 = vld [vmem:[%s57_s1] sm:$0xff]  ;;  %v14_v4 = vld [vmem:[%s57_s1 + $0x8] sm:$0xff] }
   0x3   :  { %v15_v3 = vmul.f32 %v13_v1, %v11_v0  ;;  %v16_v5 = vmul.f32 %v14_v4, %v12_v2 }
   0x5   :  { %17 = vst [vmem:[%s58_s2] sm:$0xff] %v15_v3  ;;  %18 = vst [vmem:[%s58_s2 + $0x8] sm:$0xff] %v16_v5 }

// kernel: _forward.7
= control target key start
LH: loop header
LB: loop body
LE: loop exit
PB: predicated region body
PF: predicated region fallthrough
CT: control target
= control target key end

     0   :  { %s581_s18 = smov 0   ;;  %s614_s0 = inlined_call_operand.vmem [shape: bf16[2,36,256], index: 0, kind: input, shape index: {}]   ;;  %s615_s1 = inlined_call_operand.vmem [shape: bf16[2,36,256], index: 1, kind: input, shape index: {}]   ;;  %s616_s2 = inlined_call_operand.vmem [shape: bf16[8,36], index: 2, kind: input, shape index: {}]   ;;  %s617_s3 = inlined_call_operand.vmem [shape: bf16[8,36], index: 3, kind: input, shape index: {}]   ;;  %s618_s4 = inlined_call_operand.vmem [shape: f32[8,1], index: 4, kind: input, shape index: {}]   ;;  %s619_s5 = inlined_call_operand.vmem [shape: f32[2,8,256], index: 5, kind: output, shape index: {}]  }
   0x1 LB: > { %s487_s19 = sadd.s32 4294967295, %s548_s18   ;;  %p491_p0 = scmp.ge.s32.totalorder %s548_s18, 1  ;;  %s548_s18 = sphi %s581_s18, %s15_s18  }
   0x2   : > { %p197_p1 = scmp.lt.s32.totalorder %s548_s18, 3 }
   0x4   : > { %p198_p2 = pnand %p491_p0, %p197_p1 }
   0x5   : > { %p230_p3 = scmp.lt.s32.totalorder (!%p198_p2), %s487_s19, 1 }
   0x6   : > { %201 = sbr.rel (%p198_p2) target bundleno = 231 (0xe7), region = 40 }
   0xb   : > { %v550_v0 = vmov 0   ;;  %v410_v1 = vld [vmem:[%s618_s4] sm:$0xff]  ;;  %s621_s19 = smov (!%p230_p3, %s487_s19), 1  ;;  %vm287_vm0 = vcmask 1041408   ;;  %vm283_vm1 = vcmask 293888  }
   0xc   : > { %326 = vmatprep.mubr.bf16.mxu0 %v550_v0  ;;  %401 = vmatprep.mubr.bf16.mxu1 %v550_v0  ;;  %s515_s22 = smul.u32 40, %s621_s19  ;;  %v252_v18 = vld [vmem:[%s617_s3] sm:$0xf]  ;;  %s514_s8 = sshll.u32 %s621_s19, 4 }
   0xd   : > { %525 = vset.pattern.permute.xlu0 %v550_v0  ;;  %v246_v19 = vld [vmem:[%s616_s2] sm:$0xf]  ;;  %s244_s11 = scalar_lea.vmem %s619_s5, %s514_s8 }
   0xe   : > { %413 = vperm.xlu0 %525, %v410_v1   ;;  %s239_s25 = scalar_lea.vmem %s615_s1, %s515_s22  ;;  %s234_s28 = scalar_lea.vmem %s614_s0, %s515_s22 }
   0xf   : > { %v257_v2 = vld [vmem:[%s239_s25 + $0x20] sm:$0x33]  ;;  %v530_v8 = vld [vmem:[%s239_s25 + $0x14] ss:$8 sps:$4 sm:$0xff]   ;;  %v534_v12 = vld [vmem:[%s239_s25 + $0x10] ss:$8 sps:$4 sm:$0xff]  }
  0x10   : > { %v251_v3 = vld [vmem:[%s234_s28 + $0x20] sm:$0x33]  ;;  %v501_v4 = vcombine.high %v257_v2, %v257_v2  ;;  %v500_v6 = vcombine.low %v257_v2, %v257_v2  ;;  %v532_v9 = vld [vmem:[%s234_s28 + $0x14] ss:$8 sps:$4 sm:$0xff]   ;;  %v535_v13 = vld [vmem:[%s234_s28 + $0x10] ss:$8 sps:$4 sm:$0xff]  }
  0x11   : > { %v509_v5 = vcombine.high %v251_v3, %v251_v3  ;;  %v508_v7 = vcombine.low %v251_v3, %v251_v3  ;;  %v536_v14 = vld [vmem:[%s239_s25 + $0x4] ss:$8 sps:$4 sm:$0xff]   ;;  %v540_v16 = vld [vmem:[%s239_s25] ss:$8 sps:$4 sm:$0xff]  }
  0x12   : > { %502 = vmatprep.subr.msk.bf16.mxu0 %vm287_vm0, %v501_v4  ;;  %v289_v10 = vsel %vm287_vm0, %v500_v6, 0  ;;  %v538_v15 = vld [vmem:[%s234_s28 + $0x4] ss:$8 sps:$4 sm:$0xff]   ;;  %v541_v17 = vld [vmem:[%s234_s28] ss:$8 sps:$4 sm:$0xff]  }
  0x13   : > { %510 = vmatprep.subr.msk.bf16.mxu1 %vm287_vm0, %v509_v5  ;;  %v364_v11 = vsel %vm287_vm0, %v508_v7, 0  ;;  %305 = vmatpush1.bf16.msra.mxu0 %v289_v10 }
  0x14   : > { %380 = vmatpush1.bf16.msra.mxu1 %v364_v11  ;;  %306 = vmatprep.subr.bf16.mxu0 %v530_v8 }
  0x15   : > { %381 = vmatprep.subr.bf16.mxu1 %v532_v9 }
  0x17   : > { %307 = vmatpush1.bf16.msra.mxu0 %v534_v12 }
  0x18   : > { %382 = vmatpush1.bf16.msra.mxu1 %v535_v13  ;;  %308 = vmatprep.subr.bf16.mxu0 %v536_v14 }
  0x19   : > { %383 = vmatprep.subr.bf16.mxu1 %v538_v15 }
  0x1b   : > { %309 = vmatpush1.bf16.msra.mxu0 %v540_v16 }
  0x1c   : > { %384 = vmatpush1.bf16.msra.mxu1 %v541_v17 }
  0x1e   : > { %503 = vmatmul.mubr.msk.bf16.vlgmr.msra.gmra.mxu0 %vm283_vm1, %v252_v18 }
  0x1f   : > { %511 = vmatmul.mubr.msk.bf16.vlgmr.msra.gmra.mxu1 %vm283_vm1, %v246_v19 }
  0x89   : > { %v414_v20 = vpop.permute.xlu0 %413 }
  0xde   : > { %v328_v21 = vpop.f32.mrf.mxu0 }
  0xdf   : > { %v403_v22 = vpop.f32.mrf.mxu1 }
  0xe0   : > { %v404_v23 = vadd.f32 %v403_v22, %v328_v21  ;;  %v330_v24 = vpop.f32.mrf.mxu0 }
  0xe1   : > { %v405_v25 = vpop.f32.mrf.mxu1 }
  0xe2   : > { %v416_v26 = vadd.f32 %v414_v20, %v404_v23  ;;  %v406_v27 = vadd.f32 %v405_v25, %v330_v24  ;;  %v332_v28 = vpop.f32.mrf.mxu0 }
  0xe3   : > { %v407_v29 = vpop.f32.mrf.mxu1 }
  0xe4   : > { %418 = vst [vmem:[%s244_s11] sm:$0xff] %v416_v26  ;;  %v417_v30 = vadd.f32 %v414_v20, %v406_v27  ;;  %v333_v31 = vpop.f32.mrf.mxu0 }
  0xe5   : > { %v408_v32 = vpop.f32.mrf.mxu1 }
  0xe6   : > { %419 = vst [vmem:[%s244_s11 + $0x8] sm:$0xff] %v417_v30 }
  0xe7 PF: > { %s15_s18 = sadd.s32 1, %s548_s18  }
  0xe8   : > { %p12_p4 = scmp.ge.s32.totalorder %s15_s18, 4  }
  0xea   :  { %14 = sbr.rel (!%p12_p4) target bundleno = 1 (0x1), region = 73 }

// kernel: _forward.6
= control target key start
LH: loop header
LB: loop body
LE: loop exit
PB: predicated region body
PF: predicated region fallthrough
CT: control target
= control target key end

     0   :  { %s182_s0 = inlined_call_operand.vmem [shape: f32[8,1024], index: 0, kind: input, shape index: {}]   ;;  %s183_s1 = inlined_call_operand.vmem [shape: f32[8,1024], index: 1, kind: input, shape index: {}]   ;;  %s184_s2 = inlined_call_operand.vmem [shape: f32[8,1024], index: 2, kind: input, shape index: {}]   ;;  %s185_s3 = inlined_call_operand.vmem [shape: f32[8,1024], index: 3, kind: output, shape index: {}]  }
   0x1   :  { %v14_v0 = vld [vmem:[%s182_s0] sm:$0xff]  ;;  %v15_v4 = vld [vmem:[%s182_s0 + $0x8] sm:$0xff]  ;;  %v16_v8 = vld [vmem:[%s182_s0 + $0x10] sm:$0xff] }
   0x2   :  { %v22_v1 = vld [vmem:[%s183_s1] sm:$0xff]  ;;  %v23_v5 = vld [vmem:[%s183_s1 + $0x8] sm:$0xff]  ;;  %v24_v9 = vld [vmem:[%s183_s1 + $0x10] sm:$0xff] }
   0x3   :  { %v38_v2 = vld [vmem:[%s184_s2] sm:$0xff]  ;;  %v30_v3 = vmul.f32 %v22_v1, %v14_v0  ;;  %v39_v6 = vld [vmem:[%s184_s2 + $0x8] sm:$0xff]  ;;  %v31_v7 = vmul.f32 %v23_v5, %v15_v4  ;;  %v40_v10 = vld [vmem:[%s184_s2 + $0x10] sm:$0xff]  ;;  %v32_v12 = vmul.f32 %v24_v9, %v16_v8 }
   0x4   :  { %v17_v13 = vld [vmem:[%s182_s0 + $0x18] sm:$0xff]  ;;  %v18_v18 = vld [vmem:[%s182_s0 + $0x20] sm:$0xff]  ;;  %v19_v23 = vld [vmem:[%s182_s0 + $0x28] sm:$0xff] }
   0x5   :  { %v46_v11 = vmul.f32 %v38_v2, %v30_v3  ;;  %v25_v14 = vld [vmem:[%s183_s1 + $0x18] sm:$0xff]  ;;  %v47_v16 = vmul.f32 %v39_v6, %v31_v7  ;;  %v26_v19 = vld [vmem:[%s183_s1 + $0x20] sm:$0xff]  ;;  %v48_v21 = vmul.f32 %v40_v10, %v32_v12  ;;  %v27_v24 = vld [vmem:[%s183_s1 + $0x28] sm:$0xff] }
   0x6   :  { %v41_v15 = vld [vmem:[%s184_s2 + $0x18] sm:$0xff]  ;;  %v33_v17 = vmul.f32 %v25_v14, %v17_v13  ;;  %v42_v20 = vld [vmem:[%s184_s2 + $0x20] sm:$0xff]  ;;  %v34_v22 = vmul.f32 %v26_v19, %v18_v18  ;;  %v43_v25 = vld [vmem:[%s184_s2 + $0x28] sm:$0xff]  ;;  %v35_v27 = vmul.f32 %v27_v24, %v19_v23 }
   0x7   :  { %54 = vst [vmem:[%s185_s3] sm:$0xff] %v46_v11  ;;  %55 = vst [vmem:[%s185_s3 + $0x8] sm:$0xff] %v47_v16  ;;  %v20_v28 = vld [vmem:[%s182_s0 + $0x30] sm:$0xff]  ;;  %v21_v33 = vld [vmem:[%s182_s0 + $0x38] sm:$0xff] }
   0x8   :  { %v49_v26 = vmul.f32 %v41_v15, %v33_v17  ;;  %v28_v29 = vld [vmem:[%s183_s1 + $0x30] sm:$0xff]  ;;  %56 = vst [vmem:[%s185_s3 + $0x10] sm:$0xff] %v48_v21  ;;  %v50_v31 = vmul.f32 %v42_v20, %v34_v22  ;;  %v29_v34 = vld [vmem:[%s183_s1 + $0x38] sm:$0xff]  ;;  %v51_v36 = vmul.f32 %v43_v25, %v35_v27 }
   0x9   :  { %v44_v30 = vld [vmem:[%s184_s2 + $0x30] sm:$0xff]  ;;  %v36_v32 = vmul.f32 %v28_v29, %v20_v28  ;;  %v45_v35 = vld [vmem:[%s184_s2 + $0x38] sm:$0xff]  ;;  %v37_v37 = vmul.f32 %v29_v34, %v21_v33 }
   0xa   :  { %57 = vst [vmem:[%s185_s3 + $0x18] sm:$0xff] %v49_v26  ;;  %58 = vst [vmem:[%s185_s3 + $0x20] sm:$0xff] %v50_v31 }
   0xb   :  { %v52_v38 = vmul.f32 %v44_v30, %v36_v32  ;;  %59 = vst [vmem:[%s185_s3 + $0x28] sm:$0xff] %v51_v36  ;;  %v53_v39 = vmul.f32 %v45_v35, %v37_v37 }
   0xd   :  { %60 = vst [vmem:[%s185_s3 + $0x30] sm:$0xff] %v52_v38  ;;  %61 = vst [vmem:[%s185_s3 + $0x38] sm:$0xff] %v53_v39 }

// kernel: _forward.8
= control target key start
LH: loop header
LB: loop body
LE: loop exit
PB: predicated region body
PF: predicated region fallthrough
CT: control target
= control target key end

     0   :  { %s1272_s18 = smov 0   ;;  %s1426_s0 = inlined_call_operand.vmem [shape: bf16[2,36,1024], index: 0, kind: input, shape index: {}]   ;;  %s1427_s1 = inlined_call_operand.vmem [shape: bf16[2,72,1024], index: 1, kind: input, shape index: {}]   ;;  %s1428_s2 = inlined_call_operand.vmem [shape: bf16[12,36], index: 2, kind: input, shape index: {}]   ;;  %s1429_s3 = inlined_call_operand.vmem [shape: bf16[12,72], index: 3, kind: input, shape index: {}]   ;;  %s1430_s4 = inlined_call_operand.vmem [shape: f32[12,1], index: 4, kind: input, shape index: {}]   ;;  %s1431_s5 = inlined_call_operand.vmem [shape: f32[2,12,1024], index: 5, kind: output, shape index: {}]  }
   0x1 LB: > { %s1109_s19 = sadd.s32 4294967295, %s1239_s18   ;;  %p1113_p0 = scmp.ge.s32.totalorder %s1239_s18, 1  ;;  %s1239_s18 = sphi %s1272_s18, %s15_s18  }
   0x2   : > { %p197_p1 = scmp.lt.s32.totalorder %s1239_s18, 3 }
   0x4   : > { %p198_p2 = pnand %p1113_p0, %p197_p1 }
   0x5   : > { %p230_p3 = scmp.lt.s32.totalorder (!%p198_p2), %s1109_s19, 1 }
   0x6   : > { %201 = sbr.rel (%p198_p2) target bundleno = 287 (0x11f), region = 40 }
   0xb   : > { %v1241_v0 = vmov 0   ;;  %s1433_s19 = smov (!%p230_p3, %s1109_s19), 1  ;;  %v998_v1 = vld [vmem:[%s1430_s4] sm:$0xff]  ;;  %v999_v2 = vld [vmem:[%s1430_s4 + $0x8] sm:$0xf]  ;;  %vm495_vm0 = vcmask 1043456  }
   0xc   : > { %552 = vmatprep.mubr.bf16.mxu0 %v1241_v0  ;;  %595 = vmatprep.mubr.bf16.mxu1 %v1241_v0  ;;  %s1204_s22 = smul.u32 288, %s1433_s19  ;;  %v1328_v53 = vld [vmem:[%s1429_s3] sm:$0x3f]   ;;  %vm491_vm1 = vcmask 588800   ;;  %vm801_vm2 = vcmask 1041408   ;;  %vm797_vm3 = vcmask 293888  }
   0xd   : > { %1214 = vset.pattern.permute.xlu0 %v1241_v0  ;;  %s1203_s30 = smul.u32 160, %s1433_s19  ;;  %s1202_s11 = sshll.u32 %s1433_s19, 7 }
   0xe   : > { %1002 = vperm.xlu0 %1214, %v998_v1   ;;  %s1295_s27 = scalar_lea.vmem %s1427_s1, %s1204_s22  ;;  %s1405_s14 = scalar_lea.vmem %s1431_s5, %s1202_s11 }
   0xf   : > { %v302_v3 = vld [vmem:[%s1295_s27 + $0x100] sm:$0xff]  ;;  %v303_v4 = vld [vmem:[%s1295_s27 + $0x108] sm:$0xff]  ;;  %v304_v41 = vld [vmem:[%s1295_s27 + $0x110] sm:$0xff]  ;;  %s1356_s8 = scalar_lea.vmem %s1426_s0, %s1203_s30 }
  0x10   : > { %v294_v5 = vld [vmem:[%s1295_s27 + $0xc0] sm:$0xff]  ;;  %v1152_v6 = vcombine.high %v302_v3, %v302_v3  ;;  %v1154_v7 = vcombine.high %v303_v4, %v303_v4  ;;  %v1151_v8 = vcombine.low %v302_v3, %v302_v3  ;;  %v1153_v9 = vcombine.low %v303_v4, %v303_v4  ;;  %v295_v11 = vld [vmem:[%s1295_s27 + $0xc8] sm:$0xff]  ;;  %v305_v42 = vld [vmem:[%s1295_s27 + $0x118] sm:$0xff] }
  0x11   : > { %v298_v10 = vld [vmem:[%s1295_s27 + $0xe0] sm:$0xff]  ;;  %v299_v12 = vld [vmem:[%s1295_s27 + $0xe8] sm:$0xff]  ;;  %v1156_v45 = vcombine.high %v304_v41, %v304_v41  ;;  %v1158_v46 = vcombine.high %v305_v42, %v305_v42  ;;  %v1155_v47 = vcombine.low %v304_v41, %v304_v41  ;;  %v1157_v48 = vcombine.low %v305_v42, %v305_v42  ;;  %v296_v49 = vld [vmem:[%s1295_s27 + $0xd0] sm:$0xff] }
  0x12   : > { %1007 = vperm.xlu0 %1214, %v999_v2   ;;  %v1144_v13 = vcombine.high %v294_v5, %v298_v10  ;;  %v1146_v14 = vcombine.high %v295_v11, %v299_v12  ;;  %v286_v15 = vld [vmem:[%s1295_s27 + $0x80] sm:$0xff]  ;;  %v287_v17 = vld [vmem:[%s1295_s27 + $0x88] sm:$0xff]  ;;  %1159 = vmatprep.subr.msk.bf16.mxu0 %vm495_vm0, %v1152_v6  ;;  %v497_v18 = vsel %vm495_vm0, %v1151_v8, 0  ;;  %v503_v19 = vsel %vm495_vm0, %v1153_v9, 0  ;;  %v300_v50 = vld [vmem:[%s1295_s27 + $0xf0] sm:$0xff] }
  0x13   : > { %v290_v16 = vld [vmem:[%s1295_s27 + $0xa0] sm:$0xff]  ;;  %1161 = vmatprep.subr.msk.bf16.mxu1 %vm495_vm0, %v1154_v7  ;;  %v291_v20 = vld [vmem:[%s1295_s27 + $0xa8] sm:$0xff]  ;;  %527 = vmatpush1.bf16.msra.mxu0 %v497_v18  ;;  %v1143_v21 = vcombine.low %v294_v5, %v298_v10  ;;  %v1145_v22 = vcombine.low %v295_v11, %v299_v12  ;;  %v297_v51 = vld [vmem:[%s1295_s27 + $0xd8] sm:$0xff]  ;;  %v509_v54 = vsel %vm495_vm0, %v1155_v47, 0  ;;  %v515_v55 = vsel %vm495_vm0, %v1157_v48, 0 }
  0x14   : > { %570 = vmatpush1.bf16.msra.mxu1 %v503_v19  ;;  %528 = vmatprep.subr.bf16.mxu0 %v1144_v13  ;;  %v1136_v23 = vcombine.high %v286_v15, %v290_v16  ;;  %v1138_v24 = vcombine.high %v287_v17, %v291_v20  ;;  %v278_v25 = vld [vmem:[%s1295_s27 + $0x40] sm:$0xff]  ;;  %v279_v27 = vld [vmem:[%s1295_s27 + $0x48] sm:$0xff]  ;;  %v1135_v29 = vcombine.low %v286_v15, %v290_v16  ;;  %v301_v52 = vld [vmem:[%s1295_s27 + $0xf8] sm:$0xff] }
  0x15   : > { %571 = vmatprep.subr.bf16.mxu1 %v1146_v14  ;;  %v282_v26 = vld [vmem:[%s1295_s27 + $0x60] sm:$0xff]  ;;  %v283_v28 = vld [vmem:[%s1295_s27 + $0x68] sm:$0xff]  ;;  %v1137_v30 = vcombine.low %v287_v17, %v291_v20  ;;  %v1148_v56 = vcombine.high %v296_v49, %v300_v50  ;;  %v1150_v57 = vcombine.high %v297_v51, %v301_v52  ;;  %v288_v58 = vld [vmem:[%s1295_s27 + $0x90] sm:$0xff]  ;;  %v1147_v62 = vcombine.low %v296_v49, %v300_v50 }
  0x16   : > { %v1128_v31 = vcombine.high %v278_v25, %v282_v26  ;;  %v1130_v32 = vcombine.high %v279_v27, %v283_v28  ;;  %v270_v33 = vld [vmem:[%s1295_s27] sm:$0xff]  ;;  %v271_v35 = vld [vmem:[%s1295_s27 + $0x8] sm:$0xff]  ;;  %v1127_v37 = vcombine.low %v278_v25, %v282_v26  ;;  %v1129_v38 = vcombine.low %v279_v27, %v283_v28  ;;  %v292_v59 = vld [vmem:[%s1295_s27 + $0xb0] sm:$0xff] }
  0x17   : > { %529 = vmatpush1.bf16.msra.mxu0 %v1143_v21  ;;  %v274_v34 = vld [vmem:[%s1295_s27 + $0x20] sm:$0xff]  ;;  %v275_v36 = vld [vmem:[%s1295_s27 + $0x28] sm:$0xff]  ;;  %v289_v60 = vld [vmem:[%s1295_s27 + $0x98] sm:$0xff]  ;;  %v1149_v63 = vcombine.low %v297_v51, %v301_v52  ;;  %v1140_v1 = vcombine.high %v288_v58, %v292_v59  ;;  %v1139_v7 = vcombine.low %v288_v58, %v292_v59 }
  0x18   : > { %572 = vmatpush1.bf16.msra.mxu1 %v1145_v22  ;;  %530 = vmatprep.subr.bf16.mxu0 %v1136_v23  ;;  %v1120_v39 = vcombine.high %v270_v33, %v274_v34  ;;  %v1122_v40 = vcombine.high %v271_v35, %v275_v36  ;;  %v1119_v43 = vcombine.low %v270_v33, %v274_v34  ;;  %v293_v61 = vld [vmem:[%s1295_s27 + $0xb8] sm:$0xff]  ;;  %v280_v3 = vld [vmem:[%s1295_s27 + $0x50] sm:$0xff]  ;;  %v264_v19 = vld [vmem:[%s1356_s8 + $0x80] sm:$0x33] }
  0x19   : > { %573 = vmatprep.subr.bf16.mxu1 %v1138_v24  ;;  %v1121_v44 = vcombine.low %v271_v35, %v275_v36  ;;  %v1142_v2 = vcombine.high %v289_v60, %v293_v61  ;;  %v284_v4 = vld [vmem:[%s1295_s27 + $0x70] sm:$0xff]  ;;  %v281_v5 = vld [vmem:[%s1295_s27 + $0x58] sm:$0xff]  ;;  %v1141_v8 = vcombine.low %v289_v60, %v293_v61  ;;  %v265_v20 = vld [vmem:[%s1356_s8 + $0x88] sm:$0x33]  ;;  %v1185_v23 = vcombine.high %v264_v19, %v264_v19 }
  0x1a   : > { %v285_v6 = vld [vmem:[%s1295_s27 + $0x78] sm:$0xff]  ;;  %v1132_v9 = vcombine.high %v280_v3, %v284_v4  ;;  %v272_v11 = vld [vmem:[%s1295_s27 + $0x10] sm:$0xff]  ;;  %v1131_v15 = vcombine.low %v280_v3, %v284_v4  ;;  %v1187_v24 = vcombine.high %v265_v20, %v265_v20  ;;  %v1184_v25 = vcombine.low %v264_v19, %v264_v19  ;;  %v256_v27 = vld [vmem:[%s1356_s8 + $0x40] sm:$0xff] }
  0x1b   : > { %531 = vmatpush1.bf16.msra.mxu0 %v1135_v29  ;;  %v1134_v10 = vcombine.high %v281_v5, %v285_v6  ;;  %v276_v12 = vld [vmem:[%s1295_s27 + $0x30] sm:$0xff]  ;;  %v273_v13 = vld [vmem:[%s1295_s27 + $0x18] sm:$0xff]  ;;  %v1133_v16 = vcombine.low %v281_v5, %v285_v6  ;;  %v1186_v26 = vcombine.low %v265_v20, %v265_v20  ;;  %v260_v28 = vld [vmem:[%s1356_s8 + $0x60] sm:$0xff] }
  0x1c   : > { %574 = vmatpush1.bf16.msra.mxu1 %v1137_v30  ;;  %532 = vmatprep.subr.bf16.mxu0 %v1128_v31  ;;  %v277_v14 = vld [vmem:[%s1295_s27 + $0x38] sm:$0xff]  ;;  %v1124_v17 = vcombine.high %v272_v11, %v276_v12  ;;  %v1123_v21 = vcombine.low %v272_v11, %v276_v12  ;;  %v257_v29 = vld [vmem:[%s1356_s8 + $0x48] sm:$0xff]  ;;  %v803_v31 = vsel %vm801_vm2, %v1184_v25, 0  ;;  %v1177_v33 = vcombine.high %v256_v27, %v260_v28  ;;  %v248_v35 = vld [vmem:[%s1356_s8] sm:$0xff] }
  0x1d   : > { %575 = vmatprep.subr.bf16.mxu1 %v1130_v32  ;;  %v1126_v18 = vcombine.high %v273_v13, %v277_v14  ;;  %v1125_v22 = vcombine.low %v273_v13, %v277_v14  ;;  %v261_v30 = vld [vmem:[%s1356_s8 + $0x68] sm:$0xff]  ;;  %v809_v32 = vsel %vm801_vm2, %v1186_v26, 0  ;;  %v252_v36 = vld [vmem:[%s1356_s8 + $0x20] sm:$0xff]  ;;  %v258_v51 = vld [vmem:[%s1356_s8 + $0x50] sm:$0xff] }
  0x1e   : > { %v1179_v34 = vcombine.high %v257_v29, %v261_v30  ;;  %v1169_v41 = vcombine.high %v248_v35, %v252_v36  ;;  %v262_v52 = vld [vmem:[%s1356_s8 + $0x70] sm:$0xff] }
  0x1f   : > { %533 = vmatpush1.bf16.msra.mxu0 %v1127_v37  ;;  %v249_v37 = vld [vmem:[%s1356_s8 + $0x8] sm:$0xff]  ;;  %v1181_v58 = vcombine.high %v258_v51, %v262_v52  ;;  %v250_v60 = vld [vmem:[%s1356_s8 + $0x10] sm:$0xff] }
  0x20   : > { %576 = vmatpush1.bf16.msra.mxu1 %v1129_v38  ;;  %534 = vmatprep.subr.bf16.mxu0 %v1120_v39  ;;  %v253_v38 = vld [vmem:[%s1356_s8 + $0x28] sm:$0xff]  ;;  %v1176_v39 = vcombine.low %v256_v27, %v260_v28  ;;  %v254_v61 = vld [vmem:[%s1356_s8 + $0x30] sm:$0xff] }
  0x21   : > { %577 = vmatprep.subr.bf16.mxu1 %v1122_v40  ;;  %v1178_v40 = vcombine.low %v257_v29, %v261_v30  ;;  %v1171_v42 = vcombine.high %v249_v37, %v253_v38  ;;  %v1173_v3 = vcombine.high %v250_v60, %v254_v61  ;;  %v1172_v5 = vcombine.low %v250_v60, %v254_v61 }
  0x23   : > { %535 = vmatpush1.bf16.msra.mxu0 %v1119_v43  ;;  %v266_v43 = vld [vmem:[%s1356_s8 + $0x90] sm:$0x33] }
  0x24   : > { %578 = vmatpush1.bf16.msra.mxu1 %v1121_v44  ;;  %1163 = vmatprep.subr.msk.bf16.mxu0 %vm495_vm0, %v1156_v45  ;;  %v267_v44 = vld [vmem:[%s1356_s8 + $0x98] sm:$0x33]  ;;  %v1168_v45 = vcombine.low %v248_v35, %v252_v36  ;;  %v1189_v47 = vcombine.high %v266_v43, %v266_v43  ;;  %v1188_v49 = vcombine.low %v266_v43, %v266_v43 }
  0x25   : > { %1165 = vmatprep.subr.msk.bf16.mxu1 %vm495_vm0, %v1158_v46  ;;  %v1170_v46 = vcombine.low %v249_v37, %v253_v38  ;;  %v1191_v48 = vcombine.high %v267_v44, %v267_v44  ;;  %v1190_v50 = vcombine.low %v267_v44, %v267_v44 }
  0x26   : > { %1160 = vmatmul.mubr.msk.bf16.vlgmr.msra.gmra.mxu0 %vm491_vm1, %v1328_v53 }
  0x27   : > { %1162 = vmatmul.mubr.msk.bf16.vlgmr.msra.gmra.mxu1 %vm491_vm1, %v1328_v53  ;;  %613 = vmatpush1.bf16.msra.mxu0 %v509_v54  ;;  %v263_v54 = vld [vmem:[%s1356_s8 + $0x78] sm:$0xff] }
  0x28   : > { %656 = vmatpush1.bf16.msra.mxu1 %v515_v55  ;;  %614 = vmatprep.subr.bf16.mxu0 %v1148_v56  ;;  %v1228_v55 = vld [vmem:[%s1428_s2] sm:$0x3f]   ;;  %v815_v56 = vsel %vm801_vm2, %v1188_v49, 0 }
  0x29   : > { %657 = vmatprep.subr.bf16.mxu1 %v1150_v57  ;;  %638 = vmatprep.mubr.bf16.mxu0 %v1241_v0  ;;  %v821_v57 = vsel %vm801_vm2, %v1190_v50, 0 }
  0x2a   : > { %681 = vmatprep.mubr.bf16.mxu1 %v1241_v0 }
  0x2b   : > { %615 = vmatpush1.bf16.msra.mxu0 %v1147_v62  ;;  %v251_v62 = vld [vmem:[%s1356_s8 + $0x18] sm:$0xff] }
  0x2c   : > { %658 = vmatpush1.bf16.msra.mxu1 %v1149_v63  ;;  %616 = vmatprep.subr.bf16.mxu0 %v1140_v1  ;;  %v255_v63 = vld [vmem:[%s1356_s8 + $0x38] sm:$0xff]  ;;  %v1180_v1 = vcombine.low %v258_v51, %v262_v52 }
  0x2d   : > { %659 = vmatprep.subr.bf16.mxu1 %v1142_v2  ;;  %v1175_v4 = vcombine.high %v251_v62, %v255_v63  ;;  %v1174_v6 = vcombine.low %v251_v62, %v255_v63 }
  0x2f   : > { %617 = vmatpush1.bf16.msra.mxu0 %v1139_v7 }
  0x30   : > { %660 = vmatpush1.bf16.msra.mxu1 %v1141_v8  ;;  %618 = vmatprep.subr.bf16.mxu0 %v1132_v9 }
  0x31   : > { %661 = vmatprep.subr.bf16.mxu1 %v1134_v10 }
  0x33   : > { %619 = vmatpush1.bf16.msra.mxu0 %v1131_v15 }
  0x34   : > { %662 = vmatpush1.bf16.msra.mxu1 %v1133_v16  ;;  %620 = vmatprep.subr.bf16.mxu0 %v1124_v17 }
  0x35   : > { %663 = vmatprep.subr.bf16.mxu1 %v1126_v18 }
  0x37   : > { %621 = vmatpush1.bf16.msra.mxu0 %v1123_v21 }
  0x38   : > { %664 = vmatpush1.bf16.msra.mxu1 %v1125_v22  ;;  %1192 = vmatprep.subr.msk.bf16.mxu0 %vm801_vm2, %v1185_v23 }
  0x39   : > { %1194 = vmatprep.subr.msk.bf16.mxu1 %vm801_vm2, %v1187_v24 }
  0x3a   : > { %1164 = vmatmul.mubr.msk.bf16.vlgmr.msra.gmra.mxu0 %vm491_vm1, %v1328_v53 }
  0x3b   : > { %1166 = vmatmul.mubr.msk.bf16.vlgmr.msra.gmra.mxu1 %vm491_vm1, %v1328_v53  ;;  %837 = vmatpush1.bf16.msra.mxu0 %v803_v31  ;;  %v259_v53 = vld [vmem:[%s1356_s8 + $0x58] sm:$0xff] }
  0x3c   : > { %880 = vmatpush1.bf16.msra.mxu1 %v809_v32  ;;  %838 = vmatprep.subr.bf16.mxu0 %v1177_v33  ;;  %v1183_v59 = vcombine.high %v259_v53, %v263_v54  ;;  %v1182_v2 = vcombine.low %v259_v53, %v263_v54 }
  0x3d   : > { %881 = vmatprep.subr.bf16.mxu1 %v1179_v34  ;;  %858 = vmatprep.mubr.bf16.mxu0 %v1241_v0 }
  0x3e   : > { %901 = vmatprep.mubr.bf16.mxu1 %v1241_v0 }
  0x3f   : > { %839 = vmatpush1.bf16.msra.mxu0 %v1176_v39 }
  0x40   : > { %882 = vmatpush1.bf16.msra.mxu1 %v1178_v40  ;;  %840 = vmatprep.subr.bf16.mxu0 %v1169_v41 }
  0x41   : > { %883 = vmatprep.subr.bf16.mxu1 %v1171_v42 }
  0x43   : > { %841 = vmatpush1.bf16.msra.mxu0 %v1168_v45 }
  0x44   : > { %884 = vmatpush1.bf16.msra.mxu1 %v1170_v46  ;;  %1196 = vmatprep.subr.msk.bf16.mxu0 %vm801_vm2, %v1189_v47 }
  0x45   : > { %1198 = vmatprep.subr.msk.bf16.mxu1 %vm801_vm2, %v1191_v48 }
  0x46   : > { %1193 = vmatmul.mubr.msk.bf16.vlgmr.msra.gmra.mxu0 %vm797_vm3, %v1228_v55 }
  0x47   : > { %1195 = vmatmul.mubr.msk.bf16.vlgmr.msra.gmra.mxu1 %vm797_vm3, %v1228_v55  ;;  %923 = vmatpush1.bf16.msra.mxu0 %v815_v56 }
  0x48   : > { %966 = vmatpush1.bf16.msra.mxu1 %v821_v57  ;;  %924 = vmatprep.subr.bf16.mxu0 %v1181_v58 }
  0x49   : > { %967 = vmatprep.subr.bf16.mxu1 %v1183_v59  ;;  %944 = vmatprep.mubr.bf16.mxu0 %v1241_v0 }
  0x4a   : > { %987 = vmatprep.mubr.bf16.mxu1 %v1241_v0 }
  0x4b   : > { %925 = vmatpush1.bf16.msra.mxu0 %v1180_v1 }
  0x4c   : > { %968 = vmatpush1.bf16.msra.mxu1 %v1182_v2  ;;  %926 = vmatprep.subr.bf16.mxu0 %v1173_v3 }
  0x4d   : > { %969 = vmatprep.subr.bf16.mxu1 %v1175_v4 }
  0x4f   : > { %927 = vmatpush1.bf16.msra.mxu0 %v1172_v5 }
  0x50   : > { %970 = vmatpush1.bf16.msra.mxu1 %v1174_v6 }
  0x52   : > { %1197 = vmatmul.mubr.msk.bf16.vlgmr.msra.gmra.mxu0 %vm797_vm3, %v1228_v55 }
  0x53   : > { %1199 = vmatmul.mubr.msk.bf16.vlgmr.msra.gmra.mxu1 %vm797_vm3, %v1228_v55 }
  0x89   : > { %v1003_v20 = vpop.permute.xlu0 %1002 }
  0x8d   : > { %v1008_v33 = vpop.permute.xlu0 %1007 }
  0xe6   : > { %v554_v7 = vpop.f32.mrf.mxu0 }
  0xe7   : > { %v597_v8 = vpop.f32.mrf.mxu1 }
  0xe8   : > { %v556_v9 = vpop.f32.mrf.mxu0 }
  0xe9   : > { %v599_v10 = vpop.f32.mrf.mxu1 }
  0xea   : > { %v558_v11 = vpop.f32.mrf.mxu0 }
  0xeb   : > { %v601_v12 = vpop.f32.mrf.mxu1 }
  0xec   : > { %v560_v0 = vpop.f32.mrf.mxu0 }
  0xed   : > { %v603_v13 = vpop.f32.mrf.mxu1 }
  0xfa   : > { %v640_v14 = vpop.f32.mrf.mxu0 }
  0xfb   : > { %v683_v15 = vpop.f32.mrf.mxu1 }
  0xfc   : > { %v642_v16 = vpop.f32.mrf.mxu0 }
  0xfd   : > { %v685_v17 = vpop.f32.mrf.mxu1 }
  0xfe   : > { %v644_v18 = vpop.f32.mrf.mxu0 }
  0xff   : > { %v687_v19 = vpop.f32.mrf.mxu1 }
 0x100   : > { %v646_v21 = vpop.f32.mrf.mxu0 }
 0x101   : > { %v689_v22 = vpop.f32.mrf.mxu1 }
 0x106   : > { %v860_v23 = vpop.f32.mrf.mxu0 }
 0x107   : > { %v903_v24 = vpop.f32.mrf.mxu1  ;;  %v861_v25 = vadd.f32 %v860_v23, %v554_v7 }
 0x108   : > { %v904_v26 = vadd.f32 %v903_v24, %v597_v8  ;;  %v862_v27 = vpop.f32.mrf.mxu0 }
 0x109   : > { %v905_v28 = vpop.f32.mrf.mxu1  ;;  %v1010_v29 = vadd.f32 %v1003_v20, %v861_v25  ;;  %v863_v31 = vadd.f32 %v862_v27, %v556_v9 }
 0x10a   : > { %v1012_v30 = vadd.f32 %v1003_v20, %v904_v26  ;;  %v906_v32 = vadd.f32 %v905_v28, %v599_v10  ;;  %v864_v34 = vpop.f32.mrf.mxu0 }
 0x10b   : > { %v907_v35 = vpop.f32.mrf.mxu1  ;;  %1026 = vst [vmem:[%s1405_s14] sm:$0xff] %v1010_v29  ;;  %v1011_v36 = vadd.f32 %v1003_v20, %v863_v31  ;;  %v865_v38 = vadd.f32 %v864_v34, %v558_v11 }
 0x10c   : > { %1028 = vst [vmem:[%s1405_s14 + $0x10] sm:$0xff] %v1012_v30  ;;  %v1013_v37 = vadd.f32 %v1003_v20, %v906_v32  ;;  %v908_v39 = vadd.f32 %v907_v35, %v601_v12  ;;  %v866_v40 = vpop.f32.mrf.mxu0 }
 0x10d   : > { %v909_v41 = vpop.f32.mrf.mxu1  ;;  %1027 = vst [vmem:[%s1405_s14 + $0x8] sm:$0xff] %v1011_v36  ;;  %v1018_v42 = vadd.f32 %v1008_v33, %v865_v38  ;;  %v867_v44 = vadd.f32 %v866_v40, %v560_v0 }
 0x10e   : > { %1029 = vst [vmem:[%s1405_s14 + $0x18] sm:$0xff] %v1013_v37  ;;  %v1020_v43 = vadd.f32 %v1008_v33, %v908_v39  ;;  %v910_v45 = vadd.f32 %v909_v41, %v603_v13 }
 0x10f   : > { %1034 = vst [vmem:[%s1405_s14 + $0x40] sm:$0xf] %v1018_v42  ;;  %v1019_v46 = vadd.f32 %v1008_v33, %v867_v44 }
 0x110   : > { %1036 = vst [vmem:[%s1405_s14 + $0x50] sm:$0xf] %v1020_v43  ;;  %v1021_v47 = vadd.f32 %v1008_v33, %v910_v45 }
 0x111   : > { %1035 = vst [vmem:[%s1405_s14 + $0x48] sm:$0xf] %v1019_v46 }
 0x112   : > { %1037 = vst [vmem:[%s1405_s14 + $0x58] sm:$0xf] %v1021_v47  ;;  %v946_v48 = vpop.f32.mrf.mxu0 }
 0x113   : > { %v989_v49 = vpop.f32.mrf.mxu1  ;;  %v947_v50 = vadd.f32 %v946_v48, %v640_v14 }
 0x114   : > { %v990_v51 = vadd.f32 %v989_v49, %v683_v15  ;;  %v948_v52 = vpop.f32.mrf.mxu0 }
 0x115   : > { %v991_v53 = vpop.f32.mrf.mxu1  ;;  %v1014_v54 = vadd.f32 %v1003_v20, %v947_v50  ;;  %v949_v56 = vadd.f32 %v948_v52, %v642_v16 }
 0x116   : > { %v1016_v55 = vadd.f32 %v1003_v20, %v990_v51  ;;  %v992_v57 = vadd.f32 %v991_v53, %v685_v17  ;;  %v950_v58 = vpop.f32.mrf.mxu0 }
 0x117   : > { %v993_v59 = vpop.f32.mrf.mxu1  ;;  %1030 = vst [vmem:[%s1405_s14 + $0x20] sm:$0xff] %v1014_v54  ;;  %v1015_v60 = vadd.f32 %v1003_v20, %v949_v56  ;;  %v951_v62 = vadd.f32 %v950_v58, %v644_v18 }
 0x118   : > { %1032 = vst [vmem:[%s1405_s14 + $0x30] sm:$0xff] %v1016_v55  ;;  %v1017_v61 = vadd.f32 %v1003_v20, %v992_v57  ;;  %v994_v63 = vadd.f32 %v993_v59, %v687_v19  ;;  %v952_v1 = vpop.f32.mrf.mxu0 }
 0x119   : > { %v995_v2 = vpop.f32.mrf.mxu1  ;;  %1031 = vst [vmem:[%s1405_s14 + $0x28] sm:$0xff] %v1015_v60  ;;  %v1022_v3 = vadd.f32 %v1008_v33, %v951_v62  ;;  %v953_v5 = vadd.f32 %v952_v1, %v646_v21 }
 0x11a   : > { %1033 = vst [vmem:[%s1405_s14 + $0x38] sm:$0xff] %v1017_v61  ;;  %v1024_v4 = vadd.f32 %v1008_v33, %v994_v63  ;;  %v996_v6 = vadd.f32 %v995_v2, %v689_v22 }
 0x11b   : > { %1038 = vst [vmem:[%s1405_s14 + $0x60] sm:$0xf] %v1022_v3  ;;  %v1023_v7 = vadd.f32 %v1008_v33, %v953_v5 }
 0x11c   : > { %1040 = vst [vmem:[%s1405_s14 + $0x70] sm:$0xf] %v1024_v4  ;;  %v1025_v8 = vadd.f32 %v1008_v33, %v996_v6 }
 0x11d   : > { %1039 = vst [vmem:[%s1405_s14 + $0x68] sm:$0xf] %v1023_v7 }
 0x11e   : > { %1041 = vst [vmem:[%s1405_s14 + $0x78] sm:$0xf] %v1025_v8 }
 0x11f PF: > { %s15_s18 = sadd.s32 1, %s1239_s18  }
 0x120   : > { %p12_p4 = scmp.ge.s32.totalorder %s15_s18, 4  }
 0x122   :  { %14 = sbr.rel (!%p12_p4) target bundleno = 1 (0x1), region = 73 }

// kernel: _forward.9
= control target key start
LH: loop header
LB: loop body
LE: loop exit
PB: predicated region body
PF: predicated region fallthrough
CT: control target
= control target key end

     0   :  { %s1128_s20 = smov 0   ;;  %s1288_s0 = inlined_call_operand.vmem [shape: bf16[2,108,1024], index: 0, kind: input, shape index: {}]   ;;  %s1289_s1 = inlined_call_operand.vmem [shape: bf16[12,108], index: 1, kind: input, shape index: {}]   ;;  %s1290_s2 = inlined_call_operand.vmem [shape: f32[12,1], index: 2, kind: input, shape index: {}]   ;;  %s1291_s3 = inlined_call_operand.vmem [shape: f32[12,1], index: 3, kind: input, shape index: {}]   ;;  %s1292_s4 = inlined_call_operand.<no memory space> [shape: f32[1,1], index: 4, kind: input, shape index: {}]   ;;  %s1293_s5 = inlined_call_operand.vmem [shape: f32[2,1,1024], index: 5, kind: output, shape index: {}]  }
   0x1   :  { %v10_v0 = vstv %s1292_s4 }
   0x2   :  { %11 = vst [vmem:[#allocation2] sm:$0x1] %v10_v0 }
   0x3 LB: > { %s997_s21 = sadd.s32 4294967295, %s1091_s20   ;;  %p1001_p0 = scmp.ge.s32.totalorder %s1091_s20, 1  ;;  %s1091_s20 = sphi %s1128_s20, %s17_s20  }
   0x4   : > { %p189_p1 = scmp.lt.s32.totalorder %s1091_s20, 3 }
   0x6   : > { %p190_p2 = pnand %p1001_p0, %p189_p1 }
   0x7   : > { %p216_p3 = scmp.lt.s32.totalorder (!%p190_p2), %s997_s21, 1 }
   0x8   : > { %193 = sbr.rel (%p190_p2) target bundleno = 308 (0x134), region = 40 }
   0xd   : > { %v1093_v1 = vmov 0   ;;  %v285_v2 = vld [vmem:[%s1290_s2 + $0x8] sm:$0xf]  ;;  %s1295_s21 = smov (!%p216_p3, %s997_s21), 1  ;;  %v284_v4 = vld [vmem:[%s1290_s2] sm:$0xff]  ;;  %vm577_vm0 = vcmask 1045504  }
   0xe   : > { %634 = vmatprep.mubr.bf16.mxu0 %v1093_v1  ;;  %677 = vmatprep.mubr.bf16.mxu1 %v1093_v1  ;;  %v775_v3 = vld [vmem:[%s1291_s3 + $0x8] sm:$0xf]  ;;  %s1071_s25 = smul.u32 448, %s1295_s21  ;;  %v774_v5 = vld [vmem:[%s1291_s3] sm:$0xff]  ;;  %vm573_vm1 = vcmask 883712   ;;  %vm802_vm2 = vcmask 1043456  }
   0xf   : > { %1082 = vset.pattern.permute.xlu0 %v1093_v1  ;;  %1083 = vset.pattern.permute.xlu1 %v1093_v1  ;;  %v867_v27 = vld [vmem:[#allocation2] sm:$0x1]  ;;  %s1003_s10 = sshll.u32 %s1295_s21, 3 }
  0x10   : > { %293 = vperm.xlu0 %1082, %v285_v2   ;;  %783 = vperm.xlu1 %1083, %v775_v3   ;;  %s1158_s7 = scalar_lea.vmem %s1288_s0, %s1071_s25  ;;  %s224_s13 = scalar_lea.vmem %s1293_s5, %s1003_s10 }
  0x11   : > { %v276_v6 = vld [vmem:[%s1158_s7 + $0x180] sm:$0xff]  ;;  %v277_v8 = vld [vmem:[%s1158_s7 + $0x188] sm:$0xff]  ;;  %v278_v63 = vld [vmem:[%s1158_s7 + $0x190] sm:$0xff] }
  0x12   : > { %v280_v7 = vld [vmem:[%s1158_s7 + $0x1a0] sm:$0x33]  ;;  %v281_v10 = vld [vmem:[%s1158_s7 + $0x1a8] sm:$0x33]  ;;  %v282_v0 = vld [vmem:[%s1158_s7 + $0x1b0] sm:$0x33] }
  0x13   : > { %v1054_v9 = vcombine.high %v276_v6, %v280_v7  ;;  %v1053_v11 = vcombine.low %v276_v6, %v280_v7  ;;  %v268_v12 = vld [vmem:[%s1158_s7 + $0x140] sm:$0xff]  ;;  %v1056_v14 = vcombine.high %v277_v8, %v281_v10  ;;  %v1055_v15 = vcombine.low %v277_v8, %v281_v10  ;;  %v269_v17 = vld [vmem:[%s1158_s7 + $0x148] sm:$0xff]  ;;  %v279_v2 = vld [vmem:[%s1158_s7 + $0x198] sm:$0xff] }
  0x14   : > { %288 = vperm.xlu0 %1082, %v284_v4   ;;  %778 = vperm.xlu1 %1083, %v774_v5   ;;  %v272_v13 = vld [vmem:[%s1158_s7 + $0x160] sm:$0xff]  ;;  %v273_v18 = vld [vmem:[%s1158_s7 + $0x168] sm:$0xff]  ;;  %v283_v3 = vld [vmem:[%s1158_s7 + $0x1b8] sm:$0x33]  ;;  %v1058_v6 = vcombine.high %v278_v63, %v282_v0  ;;  %v1057_v7 = vcombine.low %v278_v63, %v282_v0 }
  0x15   : > { %v1046_v16 = vcombine.high %v268_v12, %v272_v13  ;;  %v260_v19 = vld [vmem:[%s1158_s7 + $0x100] sm:$0xff]  ;;  %1061 = vmatprep.subr.msk.bf16.mxu0 %vm577_vm0, %v1054_v9  ;;  %v579_v20 = vsel %vm577_vm0, %v1053_v11, 0  ;;  %v1048_v21 = vcombine.high %v269_v17, %v273_v18  ;;  %v261_v23 = vld [vmem:[%s1158_s7 + $0x108] sm:$0xff]  ;;  %1063 = vmatprep.subr.msk.bf16.mxu1 %vm577_vm0, %v1056_v14  ;;  %v585_v25 = vsel %vm577_vm0, %v1055_v15, 0  ;;  %v270_v10 = vld [vmem:[%s1158_s7 + $0x150] sm:$0xff] }
  0x16   : > { %v264_v22 = vld [vmem:[%s1158_s7 + $0x120] sm:$0xff]  ;;  %v265_v24 = vld [vmem:[%s1158_s7 + $0x128] sm:$0xff]  ;;  %605 = vmatpush1.bf16.msra.mxu0 %v579_v20  ;;  %v1045_v26 = vcombine.low %v268_v12, %v272_v13  ;;  %648 = vmatpush1.bf16.msra.mxu1 %v585_v25  ;;  %v1047_v28 = vcombine.low %v269_v17, %v273_v18  ;;  %v1060_v8 = vcombine.high %v279_v2, %v283_v3  ;;  %v274_v11 = vld [vmem:[%s1158_s7 + $0x170] sm:$0xff]  ;;  %v591_v15 = vsel %vm577_vm0, %v1057_v7, 0 }
  0x17   : > { %606 = vmatprep.subr.bf16.mxu0 %v1046_v16  ;;  %v1038_v29 = vcombine.high %v260_v19, %v264_v22  ;;  %649 = vmatprep.subr.bf16.mxu1 %v1048_v21  ;;  %v1040_v30 = vcombine.high %v261_v23, %v265_v24  ;;  %v252_v31 = vld [vmem:[%s1158_s7 + $0xc0] sm:$0xff]  ;;  %v253_v33 = vld [vmem:[%s1158_s7 + $0xc8] sm:$0xff]  ;;  %v1037_v35 = vcombine.low %v260_v19, %v264_v22  ;;  %v271_v13 = vld [vmem:[%s1158_s7 + $0x158] sm:$0xff] }
  0x18   : > { %v256_v32 = vld [vmem:[%s1158_s7 + $0xe0] sm:$0xff]  ;;  %v257_v34 = vld [vmem:[%s1158_s7 + $0xe8] sm:$0xff]  ;;  %870 = vperm.xlu0 %1082, %v867_v27   ;;  %v1039_v36 = vcombine.low %v261_v23, %v265_v24  ;;  %v1059_v9 = vcombine.low %v279_v2, %v283_v3  ;;  %v275_v14 = vld [vmem:[%s1158_s7 + $0x178] sm:$0xff]  ;;  %v1050_v16 = vcombine.high %v270_v10, %v274_v11  ;;  %v1049_v23 = vcombine.low %v270_v10, %v274_v11 }
  0x19   : > { %v1030_v37 = vcombine.high %v252_v31, %v256_v32  ;;  %v1032_v38 = vcombine.high %v253_v33, %v257_v34  ;;  %v244_v39 = vld [vmem:[%s1158_s7 + $0x80] sm:$0xff]  ;;  %v245_v41 = vld [vmem:[%s1158_s7 + $0x88] sm:$0xff]  ;;  %v1029_v43 = vcombine.low %v252_v31, %v256_v32  ;;  %v1031_v44 = vcombine.low %v253_v33, %v257_v34  ;;  %v262_v19 = vld [vmem:[%s1158_s7 + $0x110] sm:$0xff] }
  0x1a   : > { %607 = vmatpush1.bf16.msra.mxu0 %v1045_v26  ;;  %650 = vmatpush1.bf16.msra.mxu1 %v1047_v28  ;;  %v248_v40 = vld [vmem:[%s1158_s7 + $0xa0] sm:$0xff]  ;;  %v249_v42 = vld [vmem:[%s1158_s7 + $0xa8] sm:$0xff]  ;;  %v597_v17 = vsel %vm577_vm0, %v1059_v9, 0  ;;  %v1052_v18 = vcombine.high %v271_v13, %v275_v14  ;;  %v266_v20 = vld [vmem:[%s1158_s7 + $0x130] sm:$0xff]  ;;  %v1051_v24 = vcombine.low %v271_v13, %v275_v14 }
  0x1b   : > { %608 = vmatprep.subr.bf16.mxu0 %v1038_v29  ;;  %651 = vmatprep.subr.bf16.mxu1 %v1040_v30  ;;  %v1022_v45 = vcombine.high %v244_v39, %v248_v40  ;;  %v1024_v46 = vcombine.high %v245_v41, %v249_v42  ;;  %v236_v47 = vld [vmem:[%s1158_s7 + $0x40] sm:$0xff]  ;;  %v237_v49 = vld [vmem:[%s1158_s7 + $0x48] sm:$0xff]  ;;  %v1021_v51 = vcombine.low %v244_v39, %v248_v40  ;;  %v263_v21 = vld [vmem:[%s1158_s7 + $0x118] sm:$0xff] }
  0x1c   : > { %v240_v48 = vld [vmem:[%s1158_s7 + $0x60] sm:$0xff]  ;;  %v241_v50 = vld [vmem:[%s1158_s7 + $0x68] sm:$0xff]  ;;  %v1023_v52 = vcombine.low %v245_v41, %v249_v42  ;;  %v267_v22 = vld [vmem:[%s1158_s7 + $0x138] sm:$0xff]  ;;  %v1042_v25 = vcombine.high %v262_v19, %v266_v20  ;;  %v1041_v31 = vcombine.low %v262_v19, %v266_v20 }
  0x1d   : > { %v1014_v53 = vcombine.high %v236_v47, %v240_v48  ;;  %v1016_v54 = vcombine.high %v237_v49, %v241_v50  ;;  %v228_v55 = vld [vmem:[%s1158_s7] sm:$0xff]  ;;  %v229_v57 = vld [vmem:[%s1158_s7 + $0x8] sm:$0xff]  ;;  %v1013_v59 = vcombine.low %v236_v47, %v240_v48  ;;  %v1015_v60 = vcombine.low %v237_v49, %v241_v50  ;;  %v254_v27 = vld [vmem:[%s1158_s7 + $0xd0] sm:$0xff] }
  0x1e   : > { %609 = vmatpush1.bf16.msra.mxu0 %v1037_v35  ;;  %652 = vmatpush1.bf16.msra.mxu1 %v1039_v36  ;;  %v232_v56 = vld [vmem:[%s1158_s7 + $0x20] sm:$0xff]  ;;  %v233_v58 = vld [vmem:[%s1158_s7 + $0x28] sm:$0xff]  ;;  %v1044_v26 = vcombine.high %v263_v21, %v267_v22  ;;  %v258_v28 = vld [vmem:[%s1158_s7 + $0xf0] sm:$0xff]  ;;  %v1043_v32 = vcombine.low %v263_v21, %v267_v22 }
  0x1f   : > { %610 = vmatprep.subr.bf16.mxu0 %v1030_v37  ;;  %653 = vmatprep.subr.bf16.mxu1 %v1032_v38  ;;  %v1006_v61 = vcombine.high %v228_v55, %v232_v56  ;;  %v1008_v62 = vcombine.high %v229_v57, %v233_v58  ;;  %v1005_v4 = vcombine.low %v228_v55, %v232_v56  ;;  %v1201_v12 = vld [vmem:[%s1289_s1] sm:$0x3f]   ;;  %v255_v29 = vld [vmem:[%s1158_s7 + $0xd8] sm:$0xff]  ;;  %v246_v35 = vld [vmem:[%s1158_s7 + $0x90] sm:$0xff] }
  0x20   : > { %v1007_v5 = vcombine.low %v229_v57, %v233_v58  ;;  %v259_v30 = vld [vmem:[%s1158_s7 + $0xf8] sm:$0xff]  ;;  %v1034_v33 = vcombine.high %v254_v27, %v258_v28  ;;  %v250_v36 = vld [vmem:[%s1158_s7 + $0xb0] sm:$0xff]  ;;  %v1033_v39 = vcombine.low %v254_v27, %v258_v28 }
  0x21   : > { %v1036_v34 = vcombine.high %v255_v29, %v259_v30  ;;  %v247_v37 = vld [vmem:[%s1158_s7 + $0x98] sm:$0xff]  ;;  %v1026_v40 = vcombine.high %v246_v35, %v250_v36  ;;  %v238_v42 = vld [vmem:[%s1158_s7 + $0x50] sm:$0xff] }
  0x22   : > { %611 = vmatpush1.bf16.msra.mxu0 %v1029_v43  ;;  %654 = vmatpush1.bf16.msra.mxu1 %v1031_v44  ;;  %v251_v38 = vld [vmem:[%s1158_s7 + $0xb8] sm:$0xff]  ;;  %v242_v43 = vld [vmem:[%s1158_s7 + $0x70] sm:$0xff] }
  0x23   : > { %612 = vmatprep.subr.bf16.mxu0 %v1022_v45  ;;  %655 = vmatprep.subr.bf16.mxu1 %v1024_v46  ;;  %v1028_v41 = vcombine.high %v247_v37, %v251_v38  ;;  %v239_v44 = vld [vmem:[%s1158_s7 + $0x58] sm:$0xff]  ;;  %v1025_v46 = vcombine.low %v246_v35, %v250_v36  ;;  %v1027_v47 = vcombine.low %v247_v37, %v251_v38  ;;  %v230_v50 = vld [vmem:[%s1158_s7 + $0x10] sm:$0xff] }
  0x24   : > { %v243_v45 = vld [vmem:[%s1158_s7 + $0x78] sm:$0xff]  ;;  %v1018_v48 = vcombine.high %v238_v42, %v242_v43 }
  0x25   : > { %v1020_v49 = vcombine.high %v239_v44, %v243_v45  ;;  %v1019_v55 = vcombine.low %v239_v44, %v243_v45 }
  0x26   : > { %613 = vmatpush1.bf16.msra.mxu0 %v1021_v51  ;;  %656 = vmatpush1.bf16.msra.mxu1 %v1023_v52  ;;  %v234_v51 = vld [vmem:[%s1158_s7 + $0x30] sm:$0xff]  ;;  %v231_v52 = vld [vmem:[%s1158_s7 + $0x18] sm:$0xff] }
  0x27   : > { %614 = vmatprep.subr.bf16.mxu0 %v1014_v53  ;;  %657 = vmatprep.subr.bf16.mxu1 %v1016_v54  ;;  %v235_v53 = vld [vmem:[%s1158_s7 + $0x38] sm:$0xff]  ;;  %v1017_v54 = vcombine.low %v238_v42, %v242_v43  ;;  %v1010_v56 = vcombine.high %v230_v50, %v234_v51  ;;  %v1009_v58 = vcombine.low %v230_v50, %v234_v51  ;;  %v873_v42 = vlaneseq }
  0x28   : > { %v1012_v57 = vcombine.high %v231_v52, %v235_v53 }
  0x2a   : > { %615 = vmatpush1.bf16.msra.mxu0 %v1013_v59  ;;  %658 = vmatpush1.bf16.msra.mxu1 %v1015_v60  ;;  %v1011_v59 = vcombine.low %v231_v52, %v235_v53  ;;  %v1261_v52 = vshrl.u32 %v873_v42, 7 }
  0x2b   : > { %616 = vmatprep.subr.bf16.mxu0 %v1006_v61  ;;  %659 = vmatprep.subr.bf16.mxu1 %v1008_v62 }
  0x2e   : > { %617 = vmatpush1.bf16.msra.mxu0 %v1005_v4  ;;  %660 = vmatpush1.bf16.msra.mxu1 %v1007_v5 }
  0x2f   : > { %1065 = vmatprep.subr.msk.bf16.mxu0 %vm577_vm0, %v1058_v6  ;;  %1067 = vmatprep.subr.msk.bf16.mxu1 %vm577_vm0, %v1060_v8 }
  0x31   : > { %1062 = vmatmul.mubr.msk.bf16.vlgmr.msra.gmra.mxu0 %vm573_vm1, %v1201_v12  ;;  %1064 = vmatmul.mubr.msk.bf16.vlgmr.msra.gmra.mxu1 %vm573_vm1, %v1201_v12 }
  0x32   : > { %691 = vmatpush1.bf16.msra.mxu0 %v591_v15  ;;  %734 = vmatpush1.bf16.msra.mxu1 %v597_v17 }
  0x33   : > { %692 = vmatprep.subr.bf16.mxu0 %v1050_v16  ;;  %735 = vmatprep.subr.bf16.mxu1 %v1052_v18 }
  0x34   : > { %720 = vmatprep.mubr.bf16.mxu0 %v1093_v1  ;;  %763 = vmatprep.mubr.bf16.mxu1 %v1093_v1  ;;  %v1035_v1 = vcombine.low %v255_v29, %v259_v30 }
  0x36   : > { %693 = vmatpush1.bf16.msra.mxu0 %v1049_v23  ;;  %736 = vmatpush1.bf16.msra.mxu1 %v1051_v24 }
  0x37   : > { %694 = vmatprep.subr.bf16.mxu0 %v1042_v25  ;;  %737 = vmatprep.subr.bf16.mxu1 %v1044_v26 }
  0x3a   : > { %695 = vmatpush1.bf16.msra.mxu0 %v1041_v31  ;;  %738 = vmatpush1.bf16.msra.mxu1 %v1043_v32 }
  0x3b   : > { %696 = vmatprep.subr.bf16.mxu0 %v1034_v33  ;;  %739 = vmatprep.subr.bf16.mxu1 %v1036_v34 }
  0x3e   : > { %697 = vmatpush1.bf16.msra.mxu0 %v1033_v39  ;;  %740 = vmatpush1.bf16.msra.mxu1 %v1035_v1 }
  0x3f   : > { %698 = vmatprep.subr.bf16.mxu0 %v1026_v40  ;;  %741 = vmatprep.subr.bf16.mxu1 %v1028_v41 }
  0x42   : > { %699 = vmatpush1.bf16.msra.mxu0 %v1025_v46  ;;  %742 = vmatpush1.bf16.msra.mxu1 %v1027_v47 }
  0x43   : > { %700 = vmatprep.subr.bf16.mxu0 %v1018_v48  ;;  %743 = vmatprep.subr.bf16.mxu1 %v1020_v49 }
  0x46   : > { %701 = vmatpush1.bf16.msra.mxu0 %v1017_v54  ;;  %744 = vmatpush1.bf16.msra.mxu1 %v1019_v55 }
  0x47   : > { %702 = vmatprep.subr.bf16.mxu0 %v1010_v56  ;;  %745 = vmatprep.subr.bf16.mxu1 %v1012_v57 }
  0x4a   : > { %703 = vmatpush1.bf16.msra.mxu0 %v1009_v58  ;;  %746 = vmatpush1.bf16.msra.mxu1 %v1011_v59 }
  0x4d   : > { %1066 = vmatmul.mubr.msk.bf16.vlgmr.msra.gmra.mxu0 %vm573_vm1, %v1201_v12  ;;  %1068 = vmatmul.mubr.msk.bf16.vlgmr.msra.gmra.mxu1 %vm573_vm1, %v1201_v12 }
  0x8b   : > { %v1239_v62 = vpop.permute.xlu0 %293  ;;  %v1241_v4 = vpop.permute.xlu1 %783 }
  0x8f   : > { %v289_v9 = vpop.permute.xlu0 %288  ;;  %v1249_v15 = vpop.permute.xlu1 %778 }
  0xf1   : > { %v636_v60 = vpop.f32.mrf.mxu0  ;;  %v679_v61 = vpop.f32.mrf.mxu1 }
  0xf2   : > { %v637_v16 = vadd.f32 %v636_v60, %v289_v9  ;;  %v680_v20 = vadd.f32 %v679_v61, %v289_v9 }
  0xf3   : > { %v638_v63 = vpop.f32.mrf.mxu0  ;;  %v681_v0 = vpop.f32.mrf.mxu1 }
  0xf4   : > { %v639_v13 = vadd.f32 %v638_v63, %v289_v9  ;;  %v682_v18 = vadd.f32 %v681_v0, %v289_v9  ;;  %v786_v24 = vmul.f32 %v1249_v15, %v637_v16  ;;  %v788_v30 = vmul.f32 %v1249_v15, %v680_v20 }
  0xf5   : > { %v640_v2 = vpop.f32.mrf.mxu0  ;;  %v683_v3 = vpop.f32.mrf.mxu1  ;;  %v875_v20 = vsub.s32 0, %v1261_v52 }
  0xf6   : > { %v641_v6 = vadd.f32 %v640_v2, %v1239_v62  ;;  %v684_v11 = vadd.f32 %v683_v3, %v1239_v62  ;;  %v787_v23 = vmul.f32 %v1249_v15, %v639_v13  ;;  %v789_v28 = vmul.f32 %v1249_v15, %v682_v18 }
  0xf7   : > { %v642_v5 = vpop.f32.mrf.mxu0  ;;  %v685_v8 = vpop.f32.mrf.mxu1 }
  0xf8   : > { %v643_v7 = vadd.f32 %v642_v5, %v1239_v62  ;;  %v686_v10 = vadd.f32 %v685_v8, %v1239_v62  ;;  %v794_v14 = vmul.f32 %v1241_v4, %v641_v6  ;;  %v796_v19 = vmul.f32 %v1241_v4, %v684_v11 }
  0xfa   : > { %v795_v12 = vmul.f32 %v1241_v4, %v643_v7  ;;  %v797_v17 = vmul.f32 %v1241_v4, %v686_v10  ;;  %v803_v22 = vsel %vm802_vm2, %v794_v14, 0.0  ;;  %v819_v26 = vsel %vm802_vm2, %v796_v19, 0.0 }
  0xfb   : > { %v804_v29 = vadd.f32 %v803_v22, %v786_v24  ;;  %v820_v32 = vadd.f32 %v819_v26, %v788_v30  ;;  %v871_v26 = vpop.permute.xlu0 %870 }
  0xfc   : > { %v811_v21 = vsel %vm802_vm2, %v795_v12, 0.0  ;;  %v827_v25 = vsel %vm802_vm2, %v797_v17, 0.0 }
  0xfd   : > { %v812_v27 = vadd.f32 %v811_v21, %v787_v23  ;;  %v828_v31 = vadd.f32 %v827_v25, %v789_v28  ;;  %v805_v34 = vrot.slane %v804_v29, 4  ;;  %v821_v36 = vrot.slane %v820_v32, 4 }
  0xff   : > { %v813_v33 = vrot.slane %v812_v27, 4  ;;  %v829_v35 = vrot.slane %v828_v31, 4  ;;  %v806_v38 = vadd.f32 %v805_v34, %v804_v29  ;;  %v822_v1 = vadd.f32 %v821_v36, %v820_v32 }
 0x100   : > { %v1094_v29 = vmov 1966171168  }
 0x101   : > { %v814_v37 = vadd.f32 %v813_v33, %v812_v27  ;;  %v830_v39 = vadd.f32 %v829_v35, %v828_v31  ;;  %v807_v44 = vrot.slane %v806_v38, 2  ;;  %v823_v48 = vrot.slane %v822_v1, 2 }
 0x102   : > { %v898_v30 = vunpack.c.l.s4 %v1094_v29  ;;  %v876_v35 = vrot.slane %v871_v26, %v875_v20 }
 0x103   : > { %v815_v41 = vrot.slane %v814_v37, 2  ;;  %v831_v46 = vrot.slane %v830_v39, 2  ;;  %v808_v56 = vadd.f32 %v807_v44, %v806_v38  ;;  %v824_v3 = vadd.f32 %v823_v48, %v822_v1 }
 0x105   : > { %v816_v51 = vadd.f32 %v815_v41, %v814_v37  ;;  %v832_v60 = vadd.f32 %v831_v46, %v830_v39  ;;  %v809_v24 = vrot.slane %v808_v56, 1  ;;  %v825_v25 = vrot.slane %v824_v3, 1 }
 0x106   : > { %v899_v41 = vunpack.c.0.s8 %v898_v30 }
 0x107   : > { %v817_v8 = vrot.slane %v816_v51, 1  ;;  %v833_v17 = vrot.slane %v832_v60, 1  ;;  %v810_v38 = vadd.f32 %v809_v24, %v808_v56  ;;  %v826_v39 = vadd.f32 %v825_v25, %v824_v3 }
 0x109   : > { %v818_v32 = vadd.f32 %v817_v8, %v816_v51  ;;  %v879_v51 = vadd.f32 %v876_v35, %v826_v39 }
 0x10b   : > { %v878_v44 = vadd.f32 %v876_v35, %v818_v32 }
 0x10d   : > { %v722_v40 = vpop.f32.mrf.mxu0  ;;  %v765_v43 = vpop.f32.mrf.mxu1 }
 0x10e   : > { %v723_v49 = vadd.f32 %v722_v40, %v289_v9  ;;  %v766_v53 = vadd.f32 %v765_v43, %v289_v9 }
 0x10f   : > { %v724_v45 = vpop.f32.mrf.mxu0  ;;  %v767_v47 = vpop.f32.mrf.mxu1 }
 0x110   : > { %v725_v57 = vadd.f32 %v724_v45, %v289_v9  ;;  %v768_v61 = vadd.f32 %v767_v47, %v289_v9  ;;  %v790_v5 = vmul.f32 %v1249_v15, %v723_v49  ;;  %v792_v10 = vmul.f32 %v1249_v15, %v766_v53 }
 0x111   : > { %v726_v50 = vpop.f32.mrf.mxu0  ;;  %v769_v55 = vpop.f32.mrf.mxu1 }
 0x112   : > { %v727_v54 = vadd.f32 %v726_v50, %v1239_v62  ;;  %v770_v58 = vadd.f32 %v769_v55, %v1239_v62  ;;  %v791_v9 = vmul.f32 %v1249_v15, %v725_v57  ;;  %v793_v18 = vmul.f32 %v1249_v15, %v768_v61 }
 0x113   : > { %v728_v59 = vpop.f32.mrf.mxu0  ;;  %v771_v2 = vpop.f32.mrf.mxu1  ;;  %v834_v15 = vadd.f32 %v833_v17, %v832_v60  ;;  %v877_v50 = vadd.f32 %v876_v35, %v810_v38  ;;  %v902_v55 = vsub.s32 %v899_v41, %v1261_v52 }
 0x114   : > { %v798_v63 = vmul.f32 %v1241_v4, %v727_v54  ;;  %v729_v0 = vadd.f32 %v728_v59, %v1239_v62  ;;  %v800_v6 = vmul.f32 %v1241_v4, %v770_v58  ;;  %v772_v7 = vadd.f32 %v771_v2, %v1239_v62 }
 0x115   : > { %v880_v45 = vadd.f32 %v876_v35, %v834_v15  ;;  %v893_v58 = vcombine.low %v877_v50, %v878_v44 }
 0x116   : > { %v835_v11 = vsel %vm802_vm2, %v798_v63, 0.0  ;;  %v799_v12 = vmul.f32 %v1241_v4, %v729_v0  ;;  %v851_v14 = vsel %vm802_vm2, %v800_v6, 0.0  ;;  %v801_v16 = vmul.f32 %v1241_v4, %v772_v7 }
 0x117   : > { %v836_v13 = vadd.f32 %v835_v11, %v790_v5  ;;  %v852_v19 = vadd.f32 %v851_v14, %v792_v10  ;;  %v894_v59 = vcombine.low %v879_v51, %v880_v45  ;;  %v903_v5 = vrot.slane %v893_v58, %v902_v55 }
 0x118   : > { %v843_v62 = vsel %vm802_vm2, %v799_v12, 0.0  ;;  %v859_v23 = vsel %vm802_vm2, %v801_v16, 0.0 }
 0x119   : > { %v837_v21 = vrot.slane %v836_v13, 4  ;;  %v844_v22 = vadd.f32 %v843_v62, %v791_v9  ;;  %v853_v27 = vrot.slane %v852_v19, 4  ;;  %v860_v28 = vadd.f32 %v859_v23, %v793_v18 }
 0x11a   : > { %v910_v6 = vrot.slane %v894_v59, %v902_v55 }
 0x11b   : > { %v838_v4 = vadd.f32 %v837_v21, %v836_v13  ;;  %v845_v31 = vrot.slane %v844_v22, 4  ;;  %v854_v33 = vadd.f32 %v853_v27, %v852_v19  ;;  %v861_v34 = vrot.slane %v860_v28, 4 }
 0x11c   : > { %v925_v9 = vcombine.low %v903_v5, %v910_v6 }
 0x11d   : > { %v839_v36 = vrot.slane %v838_v4, 2  ;;  %v846_v37 = vadd.f32 %v845_v31, %v844_v22  ;;  %v855_v1 = vrot.slane %v854_v33, 2  ;;  %v862_v40 = vadd.f32 %v861_v34, %v860_v28 }
 0x11e   : > { %v933_v14 = vrot.slane %v925_v9, %v902_v55 }
 0x11f   : > { %v840_v42 = vadd.f32 %v839_v36, %v838_v4  ;;  %v847_v43 = vrot.slane %v846_v37, 2  ;;  %v856_v46 = vadd.f32 %v855_v1, %v854_v33  ;;  %v863_v47 = vrot.slane %v862_v40, 2 }
 0x121   : > { %v841_v48 = vrot.slane %v840_v42, 1  ;;  %v848_v49 = vadd.f32 %v847_v43, %v846_v37  ;;  %v857_v53 = vrot.slane %v856_v46, 1  ;;  %v864_v54 = vadd.f32 %v863_v47, %v862_v40 }
 0x123   : > { %v842_v57 = vadd.f32 %v841_v48, %v840_v42  ;;  %v849_v56 = vrot.slane %v848_v49, 1  ;;  %v858_v60 = vadd.f32 %v857_v53, %v856_v46  ;;  %v865_v61 = vrot.slane %v864_v54, 1 }
 0x125   : > { %v850_v63 = vadd.f32 %v849_v56, %v848_v49  ;;  %v866_v0 = vadd.f32 %v865_v61, %v864_v54  ;;  %v881_v2 = vadd.f32 %v876_v35, %v842_v57  ;;  %v883_v7 = vadd.f32 %v876_v35, %v858_v60 }
 0x127   : > { %v882_v3 = vadd.f32 %v876_v35, %v850_v63  ;;  %v884_v8 = vadd.f32 %v876_v35, %v866_v0 }
 0x129   : > { %v895_v10 = vcombine.low %v881_v2, %v882_v3  ;;  %v896_v11 = vcombine.low %v883_v7, %v884_v8 }
 0x12b   : > { %v917_v12 = vrot.slane %v895_v10, %v902_v55  ;;  %v924_v52 = vrot.slane %v896_v11, %v902_v55 }
 0x12d   : > { %v926_v13 = vcombine.low %v917_v12, %v924_v52 }
 0x12f   : > { %v940_v16 = vrot.slane %v926_v13, %v902_v55 }
 0x131   : > { %v941_v17 = vcombine.low %v933_v14, %v940_v16 }
 0x133   : > { %943 = vst [vmem:[%s224_s13] sm:$0xff] %v941_v17 }
 0x134 PF: > { %s17_s20 = sadd.s32 1, %s1091_s20  }
 0x135   : > { %p14_p4 = scmp.ge.s32.totalorder %s17_s20, 4  }
 0x137   :  { %16 = sbr.rel (!%p14_p4) target bundleno = 3 (0x3), region = 70 }

</bundles_post_ra>
